<compile_context>
chip_gen: v7x
topology: tpu7x:2x2x1
jax: 0.10.0
libtpu: 0.0.40
codegen_flags: <defaults>
</compile_context>

<pallas_src>
import numpy as np

import jax
import jax.numpy as jnp
from jax.experimental import pallas as pl
from jax.experimental.pallas import tpu as pltpu

CPAD = 128   # channel (lane) padding
SUB = 8      # sublane tile (row padding granularity)


def _round_up(v, m):
    return ((v + m - 1) // m) * m


# ------------------------------ fused Pallas kernel ------------------------------ #
def _make_kernel(plan, N):
    n_layers = len(plan)

    def kernel(*refs):
        x_ref = refs[0]
        out_ref = refs[1 + 3 * n_layers]
        scratch = refs[2 + 3 * n_layers:]

        # Zero the inter-layer buffers: conv zero-padding rows (and never-written tail
        # rows) must be exact zeros before any layer writes its real rows.
        for s_ref in scratch:
            s_ref[...] = jnp.zeros_like(s_ref)

        h_ref = x_ref
        for i, cfg in enumerate(plan):
            w_ref, gamma_ref, beta_ref = refs[1 + 3 * i: 4 + 3 * i]
            K, s = cfg["K"], cfg["stride"]
            Lout, LpadIn = cfg["Lout"], cfg["LpadIn"]
            r_real, r_pad = cfg["rows_real"], cfg["rows_pad"]

            # --- im2col without selection matmuls: one strided sublane read per tap,
            #     taps concatenated along lanes, batches along sublanes.
            blocks = []
            for n in range(N):
                base = n * LpadIn
                taps = []
                for k in range(K):
                    if s > 1:
                        idx = pl.ds(base + k, Lout, stride=s)
                    else:
                        idx = pl.ds(base + k, Lout)
                    taps.append(h_ref[idx, :])
                blocks.append(taps[0] if K == 1 else jnp.concatenate(taps, axis=1))
            xcol = blocks[0] if N == 1 else jnp.concatenate(blocks, axis=0)
            if r_pad > r_real:
                xcol = jnp.concatenate(
                    [xcol, jnp.zeros((r_pad - r_real, xcol.shape[1]), xcol.dtype)],
                    axis=0)

            # --- one deep MXU matmul per layer (contraction depth K*128),
            #     bf16 inputs, f32 accumulation.
            y = jnp.dot(xcol.astype(jnp.bfloat16), w_ref[...],
                        preferred_element_type=jnp.float32)

            if cfg["use_bn"]:
                # Training-mode batch stats over the N*Lout real rows; padded rows /
                # padded lanes are exactly zero pre-BN so plain sums are exact.
                inv_n = 1.0 / r_real
                mean = jnp.sum(y, axis=0, keepdims=True) * inv_n
                ex2 = jnp.sum(y * y, axis=0, keepdims=True) * inv_n
                var = jnp.maximum(ex2 - mean * mean, 0.0)   # clamp: no negative var
                y = (y - mean) * jax.lax.rsqrt(var + 1e-5)
                y = y * gamma_ref[...] + beta_ref[...]      # gamma/beta zero on pad lanes
            if cfg["leaky"]:
                y = jnp.where(y >= 0, y, 0.2 * y)
            if cfg["sigmoid"]:
                y = 1.0 / (1.0 + jnp.exp(-y))               # exact sigmoid

            if i + 1 < n_layers:
                nxt = scratch[i]
                off, LpadOut = cfg["out_offset"], cfg["LpadOut"]
                # Write only the real rows at their conv-pad offsets -> padded rows of
                # the next buffer stay exact zeros (post-BN re-masking for free).
                for n in range(N):
                    nxt[pl.ds(n * LpadOut + off, Lout), :] = \
                        y[n * Lout:(n + 1) * Lout, :].astype(nxt.dtype)
                h_ref = nxt
            else:
                out_ref[...] = y.astype(out_ref.dtype)

    return kernel


# ----------------------------------- parameters ---------------------------------- #
def init_params(key, features, sequence_len, out_features=1):
    nc, ndf = features, sequence_len
    # (cin, cout, K, stride, pad, use_bn, leaky, sigmoid) mirrors the nn.Sequential
    cfgs = [
        (nc,      ndf,          4, 2, 1, False, True,  False),
        (ndf,     ndf * 2,      4, 2, 1, True,  True,  False),
        (ndf * 2, ndf * 4,      4, 2, 1, True,  True,  False),
        (ndf * 4, ndf * 8,      2, 2, 1, True,  True,  False),
        (ndf * 8, out_features, 2, 1, 0, False, False, True),
    ]
    layers = []
    for (cin, cout, K, s, p, bn, lk, sg) in cfgs:
        key, sub = jax.random.split(key)
        w = jax.random.normal(sub, (cout, cin, K), jnp.float32) * 0.1
        layers.append(dict(w=w, cin=cin, cout=cout, K=K, stride=s, pad=p,
                           use_bn=bn, leaky=lk, sigmoid=sg,
                           gamma=jnp.ones((cout,), jnp.float32),
                           beta=jnp.zeros((cout,), jnp.float32)))
    return layers


# ---------------------------------- static plan ----------------------------------- #
def _build_plan(layers, N, L0):
    n_layers = len(layers)
    plan, operands, scratch_rows = [], [], []
    Lin = L0
    LpadIn = _round_up(L0 + 2 * layers[0]["pad"], SUB)   # layer-1 input segment length
    Lpad0 = LpadIn
    for i, layer in enumerate(layers):
        K, s, p = layer["K"], layer["stride"], layer["pad"]
        cin, cout = layer["cin"], layer["cout"]
        assert cin <= CPAD and cout <= CPAD
        Lout = (Lin + 2 * p - K) // s + 1
        rows_real = N * Lout
        rows_pad = max(SUB, _round_up(rows_real, SUB))
        if i + 1 < n_layers:
            p_next = layers[i + 1]["pad"]
            LpadOut = max(SUB, _round_up(Lout + 2 * p_next, SUB))
            scratch_rows.append(N * LpadOut)
            out_offset = p_next
        else:
            LpadOut, out_offset = 0, 0
        # Per-layer weights packed for the fused-tap matmul: (K*128, 128) bf16,
        # W[k*CPAD + cin_idx, cout_idx] = w[cout_idx, cin_idx, k]; zero elsewhere.
        W = np.zeros((K * CPAD, CPAD), np.float32)
        wn = np.asarray(layer["w"])                       # (cout, cin, K)
        for k in range(K):
            W[k * CPAD:k * CPAD + cin, :cout] = wn[:, :, k].T
        gamma = np.zeros((1, CPAD), np.float32)           # zero on padded lanes
        beta = np.zeros((1, CPAD), np.float32)
        gamma[0, :cout] = np.asarray(layer["gamma"])
        beta[0, :cout] = np.asarray(layer["beta"])
        plan.append(dict(K=K, stride=s, Lout=Lout, LpadIn=LpadIn, LpadOut=LpadOut,
                         rows_real=rows_real, rows_pad=rows_pad, out_offset=out_offset,
                         use_bn=layer["use_bn"], leaky=layer["leaky"],
                         sigmoid=layer["sigmoid"]))
        operands += [jnp.asarray(W, jnp.bfloat16),
                     jnp.asarray(gamma), jnp.asarray(beta)]
        Lin, LpadIn = Lout, LpadOut
    return plan, operands, Lpad0, scratch_rows


# ------------------------------------ forward ------------------------------------ #
def build_discriminator(layers, N, L0):
    """Builds the plan / packed weights ONCE and returns a jitted forward(x)."""
    plan, operands, Lpad0, scratch_rows = _build_plan(layers, N, L0)
    C0, p0 = layers[0]["cin"], layers[0]["pad"]
    cout_last, L_last = layers[-1]["cout"], plan[-1]["Lout"]
    rows_out = plan[-1]["rows_pad"]

    vmem = pl.BlockSpec(memory_space=pltpu.MemorySpace.VMEM)
    call = pl.pallas_call(
        _make_kernel(plan, N),
        out_shape=jax.ShapeDtypeStruct((rows_out, CPAD), jnp.float32),
        in_specs=[vmem] * (1 + len(operands)),
        out_specs=vmem,
        scratch_shapes=[pltpu.VMEM((r, CPAD), jnp.float32) for r in scratch_rows],
        compiler_params=pltpu.CompilerParams(vmem_limit_bytes=32 * 1024 * 1024),
    )

    @jax.jit
    def forward(x):
        # NCL -> channels-last, placed at the conv-pad offset of the padded row slab.
        xcl = jnp.transpose(x, (0, 2, 1)).astype(jnp.float32)        # (N, L0, C0)
        x_pad = jnp.zeros((N, Lpad0, CPAD), jnp.float32)
        x_pad = x_pad.at[:, p0:p0 + L0, :C0].set(xcl).reshape(N * Lpad0, CPAD)
        out = call(x_pad, *operands)
        y = out[:N * L_last, :cout_last]                              # (N*Lout, Cout)
        return jnp.transpose(y.reshape(N, L_last, cout_last), (0, 2, 1))

    return forward


# --------------------------- pure-JAX reference (check) --------------------------- #
def reference_forward(x, layers):
    h = x
    for layer in layers:
        w = layer["w"]
        s, p = layer["stride"], layer["pad"]
        h = jax.lax.conv_general_dilated(
            h, w, (s,), [(p, p)], dimension_numbers=("NCH", "OIH", "NCH"))
        if layer["use_bn"]:
            mean = jnp.mean(h, axis=(0, 2), keepdims=True)
            var = jnp.mean((h - mean) ** 2, axis=(0, 2), keepdims=True)
            h = (h - mean) * jax.lax.rsqrt(var + 1e-5)
            h = h * layer["gamma"].reshape(1, -1, 1) + layer["beta"].reshape(1, -1, 1)
        if layer["leaky"]:
            h = jnp.where(h >= 0, h, 0.2 * h)
        if layer["sigmoid"]:
            h = jax.nn.sigmoid(h)
    return h


# -------------------------------------- main -------------------------------------- #
if __name__ == "__main__":
    key = jax.random.PRNGKey(0)
    batch, features, sequence_len = 2, 4, 16      # nc=4, ndf=16, L=16

    key, xk = jax.random.split(key)
    x = jax.random.normal(xk, (batch, features, sequence_len), jnp.float32)

    layers = init_params(key, features, sequence_len, out_features=1)

    # Plan / packed weights built once; forward is jitted and reusable across calls.
    forward = build_discriminator(layers, batch, sequence_len)

    out = jax.block_until_ready(forward(x))
    ref = jax.block_until_ready(reference_forward(x, layers))

    assert out.shape == (batch, 1, 1), out.shape
    # bf16 matmul inputs vs f32 reference -> loose tolerance
    assert jnp.allclose(out, ref, atol=5e-2, rtol=5e-2), (out, ref)

    print("KERNEL_OK")
</pallas_src>

<mosaic_0001>
module attributes {stable_mosaic.version = 11 : i64} {
  func.func @kernel(%arg0: memref<48x128xf32, #tpu.memory_space<vmem>>, %arg1: memref<512x128xbf16, #tpu.memory_space<vmem>>, %arg2: memref<1x128xf32, #tpu.memory_space<vmem>>, %arg3: memref<1x128xf32, #tpu.memory_space<vmem>>, %arg4: memref<512x128xbf16, #tpu.memory_space<vmem>>, %arg5: memref<1x128xf32, #tpu.memory_space<vmem>>, %arg6: memref<1x128xf32, #tpu.memory_space<vmem>>, %arg7: memref<512x128xbf16, #tpu.memory_space<vmem>>, %arg8: memref<1x128xf32, #tpu.memory_space<vmem>>, %arg9: memref<1x128xf32, #tpu.memory_space<vmem>>, %arg10: memref<256x128xbf16, #tpu.memory_space<vmem>>, %arg11: memref<1x128xf32, #tpu.memory_space<vmem>>, %arg12: memref<1x128xf32, #tpu.memory_space<vmem>>, %arg13: memref<256x128xbf16, #tpu.memory_space<vmem>>, %arg14: memref<1x128xf32, #tpu.memory_space<vmem>>, %arg15: memref<1x128xf32, #tpu.memory_space<vmem>>, %arg16: memref<8x128xf32, #tpu.memory_space<vmem>>, %arg17: memref<32x128xf32, #tpu.memory_space<vmem>>, %arg18: memref<16x128xf32, #tpu.memory_space<vmem>>, %arg19: memref<16x128xf32, #tpu.memory_space<vmem>>, %arg20: memref<16x128xf32, #tpu.memory_space<vmem>>) attributes {dimension_semantics = [], scalar_prefetch = 0 : i64, scratch_operands = 4 : i64, tpu.core_type = #tpu.core_type<tc>} {
    %cst = arith.constant 0.000000e+00 : f32
    %0 = vector.broadcast %cst : f32 to vector<32x128xf32>
    %c0 = arith.constant 0 : index
    %c0_0 = arith.constant 0 : index
    %1 = vector.load %arg17[%c0, %c0_0] : memref<32x128xf32, #tpu.memory_space<vmem>>, vector<32x128xf32>
    tpu.vector_store %arg17[%c0, %c0_0], %0 {strides = array<i32>} : memref<32x128xf32, #tpu.memory_space<vmem>>, vector<32x128xf32>,
    %cst_1 = arith.constant 0.000000e+00 : f32
    %2 = vector.broadcast %cst_1 : f32 to vector<16x128xf32>
    %c0_2 = arith.constant 0 : index
    %c0_3 = arith.constant 0 : index
    %3 = vector.load %arg18[%c0_2, %c0_3] : memref<16x128xf32, #tpu.memory_space<vmem>>, vector<16x128xf32>
    tpu.vector_store %arg18[%c0_2, %c0_3], %2 {strides = array<i32>} : memref<16x128xf32, #tpu.memory_space<vmem>>, vector<16x128xf32>,
    %cst_4 = arith.constant 0.000000e+00 : f32
    %4 = vector.broadcast %cst_4 : f32 to vector<16x128xf32>
    %c0_5 = arith.constant 0 : index
    %c0_6 = arith.constant 0 : index
    %5 = vector.load %arg19[%c0_5, %c0_6] : memref<16x128xf32, #tpu.memory_space<vmem>>, vector<16x128xf32>
    tpu.vector_store %arg19[%c0_5, %c0_6], %4 {strides = array<i32>} : memref<16x128xf32, #tpu.memory_space<vmem>>, vector<16x128xf32>,
    %cst_7 = arith.constant 0.000000e+00 : f32
    %6 = vector.broadcast %cst_7 : f32 to vector<16x128xf32>
    %c0_8 = arith.constant 0 : index
    %c0_9 = arith.constant 0 : index
    %7 = vector.load %arg20[%c0_8, %c0_9] : memref<16x128xf32, #tpu.memory_space<vmem>>, vector<16x128xf32>
    tpu.vector_store %arg20[%c0_8, %c0_9], %6 {strides = array<i32>} : memref<16x128xf32, #tpu.memory_space<vmem>>, vector<16x128xf32>,
    %c0_10 = arith.constant 0 : index
    %c0_11 = arith.constant 0 : index
    %8 = tpu.strided_load %arg0[%c0_10, %c0_11] {strides = array<i32: 2, 1>} : memref<48x128xf32, #tpu.memory_space<vmem>>, vector<8x128xf32>
    %c1 = arith.constant 1 : index
    %c0_12 = arith.constant 0 : index
    %9 = tpu.strided_load %arg0[%c1, %c0_12] {strides = array<i32: 2, 1>} : memref<48x128xf32, #tpu.memory_space<vmem>>, vector<8x128xf32>
    %c2 = arith.constant 2 : index
    %c0_13 = arith.constant 0 : index
    %10 = tpu.strided_load %arg0[%c2, %c0_13] {strides = array<i32: 2, 1>} : memref<48x128xf32, #tpu.memory_space<vmem>>, vector<8x128xf32>
    %c3 = arith.constant 3 : index
    %c0_14 = arith.constant 0 : index
    %11 = tpu.strided_load %arg0[%c3, %c0_14] {strides = array<i32: 2, 1>} : memref<48x128xf32, #tpu.memory_space<vmem>>, vector<8x128xf32>
    %12 = tpu.concatenate %8, %9, %10, %11 in 1 : vector<8x128xf32>, vector<8x128xf32>, vector<8x128xf32>, vector<8x128xf32> -> vector<8x512xf32>
    %c24 = arith.constant 24 : index
    %c0_15 = arith.constant 0 : index
    %13 = tpu.strided_load %arg0[%c24, %c0_15] {strides = array<i32: 2, 1>} : memref<48x128xf32, #tpu.memory_space<vmem>>, vector<8x128xf32>
    %c25 = arith.constant 25 : index
    %c0_16 = arith.constant 0 : index
    %14 = tpu.strided_load %arg0[%c25, %c0_16] {strides = array<i32: 2, 1>} : memref<48x128xf32, #tpu.memory_space<vmem>>, vector<8x128xf32>
    %c26 = arith.constant 26 : index
    %c0_17 = arith.constant 0 : index
    %15 = tpu.strided_load %arg0[%c26, %c0_17] {strides = array<i32: 2, 1>} : memref<48x128xf32, #tpu.memory_space<vmem>>, vector<8x128xf32>
    %c27 = arith.constant 27 : index
    %c0_18 = arith.constant 0 : index
    %16 = tpu.strided_load %arg0[%c27, %c0_18] {strides = array<i32: 2, 1>} : memref<48x128xf32, #tpu.memory_space<vmem>>, vector<8x128xf32>
    %17 = tpu.concatenate %13, %14, %15, %16 in 1 : vector<8x128xf32>, vector<8x128xf32>, vector<8x128xf32>, vector<8x128xf32> -> vector<8x512xf32>
    %18 = tpu.concatenate %12, %17 in 0 : vector<8x512xf32>, vector<8x512xf32> -> vector<16x512xf32>
    %19 = arith.truncf %18 : vector<16x512xf32> to vector<16x512xbf16>
    %c0_19 = arith.constant 0 : index
    %c0_20 = arith.constant 0 : index
    %20 = vector.load %arg1[%c0_19, %c0_20] : memref<512x128xbf16, #tpu.memory_space<vmem>>, vector<512x128xbf16>
    %cst_21 = arith.constant dense<0.000000e+00> : vector<16x128xf32>
    %21 = tpu.matmul %19, %20, %cst_21 {dimension_numbers = #tpu.dot_dimension_numbers<[1], [0], [0], [1], [0, 0, 1, 1], [], []>} : vector<16x512xbf16>, vector<512x128xbf16>, vector<16x128xf32> -> vector<16x128xf32>
    %cst_22 = arith.constant 0.000000e+00 : f32
    %22 = vector.broadcast %cst_22 : f32 to vector<16x128xf32>
    %23 = arith.cmpf oge, %21, %22 : vector<16x128xf32>
    %cst_23 = arith.constant 2.000000e-01 : f32
    %24 = vector.broadcast %cst_23 : f32 to vector<16x128xf32>
    %25 = arith.mulf %24, %21 : vector<16x128xf32>
    %26 = arith.select %23, %21, %25 : vector<16x128xi1>, vector<16x128xf32>
    %27 = vector.extract_strided_slice %26 {offsets = [0, 0], sizes = [8, 128], strides = [1, 1]} : vector<16x128xf32> to vector<8x128xf32>
    %c1_24 = arith.constant 1 : index
    %c0_25 = arith.constant 0 : index
    %28 = vector.load %arg17[%c1_24, %c0_25] : memref<32x128xf32, #tpu.memory_space<vmem>>, vector<8x128xf32>
    tpu.vector_store %arg17[%c1_24, %c0_25], %27 {strides = array<i32>} : memref<32x128xf32, #tpu.memory_space<vmem>>, vector<8x128xf32>,
    %29 = vector.extract_strided_slice %26 {offsets = [8, 0], sizes = [8, 128], strides = [1, 1]} : vector<16x128xf32> to vector<8x128xf32>
    %c17 = arith.constant 17 : index
    %c0_26 = arith.constant 0 : index
    %30 = vector.load %arg17[%c17, %c0_26] : memref<32x128xf32, #tpu.memory_space<vmem>>, vector<8x128xf32>
    tpu.vector_store %arg17[%c17, %c0_26], %29 {strides = array<i32>} : memref<32x128xf32, #tpu.memory_space<vmem>>, vector<8x128xf32>,
    %c0_27 = arith.constant 0 : index
    %c0_28 = arith.constant 0 : index
    %31 = tpu.strided_load %arg17[%c0_27, %c0_28] {strides = array<i32: 2, 1>} : memref<32x128xf32, #tpu.memory_space<vmem>>, vector<4x128xf32>
    %c1_29 = arith.constant 1 : index
    %c0_30 = arith.constant 0 : index
    %32 = tpu.strided_load %arg17[%c1_29, %c0_30] {strides = array<i32: 2, 1>} : memref<32x128xf32, #tpu.memory_space<vmem>>, vector<4x128xf32>
    %c2_31 = arith.constant 2 : index
    %c0_32 = arith.constant 0 : index
    %33 = tpu.strided_load %arg17[%c2_31, %c0_32] {strides = array<i32: 2, 1>} : memref<32x128xf32, #tpu.memory_space<vmem>>, vector<4x128xf32>
    %c3_33 = arith.constant 3 : index
    %c0_34 = arith.constant 0 : index
    %34 = tpu.strided_load %arg17[%c3_33, %c0_34] {strides = array<i32: 2, 1>} : memref<32x128xf32, #tpu.memory_space<vmem>>, vector<4x128xf32>
    %35 = tpu.concatenate %31, %32, %33, %34 in 1 : vector<4x128xf32>, vector<4x128xf32>, vector<4x128xf32>, vector<4x128xf32> -> vector<4x512xf32>
    %c16 = arith.constant 16 : index
    %c0_35 = arith.constant 0 : index
    %36 = tpu.strided_load %arg17[%c16, %c0_35] {strides = array<i32: 2, 1>} : memref<32x128xf32, #tpu.memory_space<vmem>>, vector<4x128xf32>
    %c17_36 = arith.constant 17 : index
    %c0_37 = arith.constant 0 : index
    %37 = tpu.strided_load %arg17[%c17_36, %c0_37] {strides = array<i32: 2, 1>} : memref<32x128xf32, #tpu.memory_space<vmem>>, vector<4x128xf32>
    %c18 = arith.constant 18 : index
    %c0_38 = arith.constant 0 : index
    %38 = tpu.strided_load %arg17[%c18, %c0_38] {strides = array<i32: 2, 1>} : memref<32x128xf32, #tpu.memory_space<vmem>>, vector<4x128xf32>
    %c19 = arith.constant 19 : index
    %c0_39 = arith.constant 0 : index
    %39 = tpu.strided_load %arg17[%c19, %c0_39] {strides = array<i32: 2, 1>} : memref<32x128xf32, #tpu.memory_space<vmem>>, vector<4x128xf32>
    %40 = tpu.concatenate %36, %37, %38, %39 in 1 : vector<4x128xf32>, vector<4x128xf32>, vector<4x128xf32>, vector<4x128xf32> -> vector<4x512xf32>
    %41 = tpu.concatenate %35, %40 in 0 : vector<4x512xf32>, vector<4x512xf32> -> vector<8x512xf32>
    %42 = arith.truncf %41 : vector<8x512xf32> to vector<8x512xbf16>
    %c0_40 = arith.constant 0 : index
    %c0_41 = arith.constant 0 : index
    %43 = vector.load %arg4[%c0_40, %c0_41] : memref<512x128xbf16, #tpu.memory_space<vmem>>, vector<512x128xbf16>
    %cst_42 = arith.constant dense<0.000000e+00> : vector<8x128xf32>
    %44 = tpu.matmul %42, %43, %cst_42 {dimension_numbers = #tpu.dot_dimension_numbers<[1], [0], [0], [1], [0, 0, 1, 1], [], []>} : vector<8x512xbf16>, vector<512x128xbf16>, vector<8x128xf32> -> vector<8x128xf32>
    %cst_43 = arith.constant dense<0.000000e+00> : vector<128xf32>
    %45 = vector.multi_reduction <add>, %44, %cst_43 [0] : vector<8x128xf32> to vector<128xf32>
    %46 = vector.shape_cast %45 : vector<128xf32> to vector<1x128xf32>
    %cst_44 = arith.constant 1.250000e-01 : f32
    %47 = vector.broadcast %cst_44 : f32 to vector<1x128xf32>
    %48 = arith.mulf %46, %47 : vector<1x128xf32>
    %49 = arith.mulf %44, %44 : vector<8x128xf32>
    %cst_45 = arith.constant dense<0.000000e+00> : vector<128xf32>
    %50 = vector.multi_reduction <add>, %49, %cst_45 [0] : vector<8x128xf32> to vector<128xf32>
    %51 = vector.shape_cast %50 : vector<128xf32> to vector<1x128xf32>
    %cst_46 = arith.constant 1.250000e-01 : f32
    %52 = vector.broadcast %cst_46 : f32 to vector<1x128xf32>
    %53 = arith.mulf %51, %52 : vector<1x128xf32>
    %54 = arith.mulf %48, %48 : vector<1x128xf32>
    %55 = arith.subf %53, %54 : vector<1x128xf32>
    %cst_47 = arith.constant 0.000000e+00 : f32
    %56 = vector.broadcast %cst_47 : f32 to vector<1x128xf32>
    %57 = arith.maximumf %55, %56 : vector<1x128xf32>
    %58 = vector.broadcast %48 : vector<1x128xf32> to vector<8x128xf32>
    %59 = arith.subf %44, %58 : vector<8x128xf32>
    %cst_48 = arith.constant 9.99999974E-6 : f32
    %60 = vector.broadcast %cst_48 : f32 to vector<1x128xf32>
    %61 = arith.addf %57, %60 : vector<1x128xf32>
    %62 = math.rsqrt %61 : vector<1x128xf32>
    %63 = vector.broadcast %62 : vector<1x128xf32> to vector<8x128xf32>
    %64 = arith.mulf %59, %63 : vector<8x128xf32>
    %c0_49 = arith.constant 0 : index
    %c0_50 = arith.constant 0 : index
    %65 = vector.load %arg5[%c0_49, %c0_50] : memref<1x128xf32, #tpu.memory_space<vmem>>, vector<1x128xf32>
    %66 = vector.broadcast %65 : vector<1x128xf32> to vector<8x128xf32>
    %67 = arith.mulf %64, %66 : vector<8x128xf32>
    %c0_51 = arith.constant 0 : index
    %c0_52 = arith.constant 0 : index
    %68 = vector.load %arg6[%c0_51, %c0_52] : memref<1x128xf32, #tpu.memory_space<vmem>>, vector<1x128xf32>
    %69 = vector.broadcast %68 : vector<1x128xf32> to vector<8x128xf32>
    %70 = arith.addf %67, %69 : vector<8x128xf32>
    %cst_53 = arith.constant 0.000000e+00 : f32
    %71 = vector.broadcast %cst_53 : f32 to vector<8x128xf32>
    %72 = arith.cmpf oge, %70, %71 : vector<8x128xf32>
    %cst_54 = arith.constant 2.000000e-01 : f32
    %73 = vector.broadcast %cst_54 : f32 to vector<8x128xf32>
    %74 = arith.mulf %73, %70 : vector<8x128xf32>
    %75 = arith.select %72, %70, %74 : vector<8x128xi1>, vector<8x128xf32>
    %76 = vector.extract_strided_slice %75 {offsets = [0, 0], sizes = [4, 128], strides = [1, 1]} : vector<8x128xf32> to vector<4x128xf32>
    %c1_55 = arith.constant 1 : index
    %c0_56 = arith.constant 0 : index
    %77 = vector.load %arg18[%c1_55, %c0_56] : memref<16x128xf32, #tpu.memory_space<vmem>>, vector<4x128xf32>
    tpu.vector_store %arg18[%c1_55, %c0_56], %76 {strides = array<i32>} : memref<16x128xf32, #tpu.memory_space<vmem>>, vector<4x128xf32>,
    %78 = vector.extract_strided_slice %75 {offsets = [4, 0], sizes = [4, 128], strides = [1, 1]} : vector<8x128xf32> to vector<4x128xf32>
    %c9 = arith.constant 9 : index
    %c0_57 = arith.constant 0 : index
    %79 = vector.load %arg18[%c9, %c0_57] : memref<16x128xf32, #tpu.memory_space<vmem>>, vector<4x128xf32>
    tpu.vector_store %arg18[%c9, %c0_57], %78 {strides = array<i32>} : memref<16x128xf32, #tpu.memory_space<vmem>>, vector<4x128xf32>,
    %c0_58 = arith.constant 0 : index
    %c0_59 = arith.constant 0 : index
    %80 = tpu.strided_load %arg18[%c0_58, %c0_59] {strides = array<i32: 2, 1>} : memref<16x128xf32, #tpu.memory_space<vmem>>, vector<2x128xf32>
    %c1_60 = arith.constant 1 : index
    %c0_61 = arith.constant 0 : index
    %81 = tpu.strided_load %arg18[%c1_60, %c0_61] {strides = array<i32: 2, 1>} : memref<16x128xf32, #tpu.memory_space<vmem>>, vector<2x128xf32>
    %c2_62 = arith.constant 2 : index
    %c0_63 = arith.constant 0 : index
    %82 = tpu.strided_load %arg18[%c2_62, %c0_63] {strides = array<i32: 2, 1>} : memref<16x128xf32, #tpu.memory_space<vmem>>, vector<2x128xf32>
    %c3_64 = arith.constant 3 : index
    %c0_65 = arith.constant 0 : index
    %83 = tpu.strided_load %arg18[%c3_64, %c0_65] {strides = array<i32: 2, 1>} : memref<16x128xf32, #tpu.memory_space<vmem>>, vector<2x128xf32>
    %84 = tpu.concatenate %80, %81, %82, %83 in 1 : vector<2x128xf32>, vector<2x128xf32>, vector<2x128xf32>, vector<2x128xf32> -> vector<2x512xf32>
    %c8 = arith.constant 8 : index
    %c0_66 = arith.constant 0 : index
    %85 = tpu.strided_load %arg18[%c8, %c0_66] {strides = array<i32: 2, 1>} : memref<16x128xf32, #tpu.memory_space<vmem>>, vector<2x128xf32>
    %c9_67 = arith.constant 9 : index
    %c0_68 = arith.constant 0 : index
    %86 = tpu.strided_load %arg18[%c9_67, %c0_68] {strides = array<i32: 2, 1>} : memref<16x128xf32, #tpu.memory_space<vmem>>, vector<2x128xf32>
    %c10 = arith.constant 10 : index
    %c0_69 = arith.constant 0 : index
    %87 = tpu.strided_load %arg18[%c10, %c0_69] {strides = array<i32: 2, 1>} : memref<16x128xf32, #tpu.memory_space<vmem>>, vector<2x128xf32>
    %c11 = arith.constant 11 : index
    %c0_70 = arith.constant 0 : index
    %88 = tpu.strided_load %arg18[%c11, %c0_70] {strides = array<i32: 2, 1>} : memref<16x128xf32, #tpu.memory_space<vmem>>, vector<2x128xf32>
    %89 = tpu.concatenate %85, %86, %87, %88 in 1 : vector<2x128xf32>, vector<2x128xf32>, vector<2x128xf32>, vector<2x128xf32> -> vector<2x512xf32>
    %90 = tpu.concatenate %84, %89 in 0 : vector<2x512xf32>, vector<2x512xf32> -> vector<4x512xf32>
    %cst_71 = arith.constant 0.000000e+00 : f32
    %91 = vector.broadcast %cst_71 : f32 to vector<4x512xf32>
    %92 = tpu.concatenate %90, %91 in 0 : vector<4x512xf32>, vector<4x512xf32> -> vector<8x512xf32>
    %93 = arith.truncf %92 : vector<8x512xf32> to vector<8x512xbf16>
    %c0_72 = arith.constant 0 : index
    %c0_73 = arith.constant 0 : index
    %94 = vector.load %arg7[%c0_72, %c0_73] : memref<512x128xbf16, #tpu.memory_space<vmem>>, vector<512x128xbf16>
    %cst_74 = arith.constant dense<0.000000e+00> : vector<8x128xf32>
    %95 = tpu.matmul %93, %94, %cst_74 {dimension_numbers = #tpu.dot_dimension_numbers<[1], [0], [0], [1], [0, 0, 1, 1], [], []>} : vector<8x512xbf16>, vector<512x128xbf16>, vector<8x128xf32> -> vector<8x128xf32>
    %cst_75 = arith.constant dense<0.000000e+00> : vector<128xf32>
    %96 = vector.multi_reduction <add>, %95, %cst_75 [0] : vector<8x128xf32> to vector<128xf32>
    %97 = vector.shape_cast %96 : vector<128xf32> to vector<1x128xf32>
    %cst_76 = arith.constant 2.500000e-01 : f32
    %98 = vector.broadcast %cst_76 : f32 to vector<1x128xf32>
    %99 = arith.mulf %97, %98 : vector<1x128xf32>
    %100 = arith.mulf %95, %95 : vector<8x128xf32>
    %cst_77 = arith.constant dense<0.000000e+00> : vector<128xf32>
    %101 = vector.multi_reduction <add>, %100, %cst_77 [0] : vector<8x128xf32> to vector<128xf32>
    %102 = vector.shape_cast %101 : vector<128xf32> to vector<1x128xf32>
    %cst_78 = arith.constant 2.500000e-01 : f32
    %103 = vector.broadcast %cst_78 : f32 to vector<1x128xf32>
    %104 = arith.mulf %102, %103 : vector<1x128xf32>
    %105 = arith.mulf %99, %99 : vector<1x128xf32>
    %106 = arith.subf %104, %105 : vector<1x128xf32>
    %cst_79 = arith.constant 0.000000e+00 : f32
    %107 = vector.broadcast %cst_79 : f32 to vector<1x128xf32>
    %108 = arith.maximumf %106, %107 : vector<1x128xf32>
    %109 = vector.broadcast %99 : vector<1x128xf32> to vector<8x128xf32>
    %110 = arith.subf %95, %109 : vector<8x128xf32>
    %cst_80 = arith.constant 9.99999974E-6 : f32
    %111 = vector.broadcast %cst_80 : f32 to vector<1x128xf32>
    %112 = arith.addf %108, %111 : vector<1x128xf32>
    %113 = math.rsqrt %112 : vector<1x128xf32>
    %114 = vector.broadcast %113 : vector<1x128xf32> to vector<8x128xf32>
    %115 = arith.mulf %110, %114 : vector<8x128xf32>
    %c0_81 = arith.constant 0 : index
    %c0_82 = arith.constant 0 : index
    %116 = vector.load %arg8[%c0_81, %c0_82] : memref<1x128xf32, #tpu.memory_space<vmem>>, vector<1x128xf32>
    %117 = vector.broadcast %116 : vector<1x128xf32> to vector<8x128xf32>
    %118 = arith.mulf %115, %117 : vector<8x128xf32>
    %c0_83 = arith.constant 0 : index
    %c0_84 = arith.constant 0 : index
    %119 = vector.load %arg9[%c0_83, %c0_84] : memref<1x128xf32, #tpu.memory_space<vmem>>, vector<1x128xf32>
    %120 = vector.broadcast %119 : vector<1x128xf32> to vector<8x128xf32>
    %121 = arith.addf %118, %120 : vector<8x128xf32>
    %cst_85 = arith.constant 0.000000e+00 : f32
    %122 = vector.broadcast %cst_85 : f32 to vector<8x128xf32>
    %123 = arith.cmpf oge, %121, %122 : vector<8x128xf32>
    %cst_86 = arith.constant 2.000000e-01 : f32
    %124 = vector.broadcast %cst_86 : f32 to vector<8x128xf32>
    %125 = arith.mulf %124, %121 : vector<8x128xf32>
    %126 = arith.select %123, %121, %125 : vector<8x128xi1>, vector<8x128xf32>
    %127 = vector.extract_strided_slice %126 {offsets = [0, 0], sizes = [2, 128], strides = [1, 1]} : vector<8x128xf32> to vector<2x128xf32>
    %c1_87 = arith.constant 1 : index
    %c0_88 = arith.constant 0 : index
    %128 = vector.load %arg19[%c1_87, %c0_88] : memref<16x128xf32, #tpu.memory_space<vmem>>, vector<2x128xf32>
    tpu.vector_store %arg19[%c1_87, %c0_88], %127 {strides = array<i32>} : memref<16x128xf32, #tpu.memory_space<vmem>>, vector<2x128xf32>,
    %129 = vector.extract_strided_slice %126 {offsets = [2, 0], sizes = [2, 128], strides = [1, 1]} : vector<8x128xf32> to vector<2x128xf32>
    %c9_89 = arith.constant 9 : index
    %c0_90 = arith.constant 0 : index
    %130 = vector.load %arg19[%c9_89, %c0_90] : memref<16x128xf32, #tpu.memory_space<vmem>>, vector<2x128xf32>
    tpu.vector_store %arg19[%c9_89, %c0_90], %129 {strides = array<i32>} : memref<16x128xf32, #tpu.memory_space<vmem>>, vector<2x128xf32>,
    %c0_91 = arith.constant 0 : index
    %c0_92 = arith.constant 0 : index
    %131 = tpu.strided_load %arg19[%c0_91, %c0_92] {strides = array<i32: 2, 1>} : memref<16x128xf32, #tpu.memory_space<vmem>>, vector<2x128xf32>
    %c1_93 = arith.constant 1 : index
    %c0_94 = arith.constant 0 : index
    %132 = tpu.strided_load %arg19[%c1_93, %c0_94] {strides = array<i32: 2, 1>} : memref<16x128xf32, #tpu.memory_space<vmem>>, vector<2x128xf32>
    %133 = tpu.concatenate %131, %132 in 1 : vector<2x128xf32>, vector<2x128xf32> -> vector<2x256xf32>
    %c8_95 = arith.constant 8 : index
    %c0_96 = arith.constant 0 : index
    %134 = tpu.strided_load %arg19[%c8_95, %c0_96] {strides = array<i32: 2, 1>} : memref<16x128xf32, #tpu.memory_space<vmem>>, vector<2x128xf32>
    %c9_97 = arith.constant 9 : index
    %c0_98 = arith.constant 0 : index
    %135 = tpu.strided_load %arg19[%c9_97, %c0_98] {strides = array<i32: 2, 1>} : memref<16x128xf32, #tpu.memory_space<vmem>>, vector<2x128xf32>
    %136 = tpu.concatenate %134, %135 in 1 : vector<2x128xf32>, vector<2x128xf32> -> vector<2x256xf32>
    %137 = tpu.concatenate %133, %136 in 0 : vector<2x256xf32>, vector<2x256xf32> -> vector<4x256xf32>
    %cst_99 = arith.constant 0.000000e+00 : f32
    %138 = vector.broadcast %cst_99 : f32 to vector<4x256xf32>
    %139 = tpu.concatenate %137, %138 in 0 : vector<4x256xf32>, vector<4x256xf32> -> vector<8x256xf32>
    %140 = arith.truncf %139 : vector<8x256xf32> to vector<8x256xbf16>
    %c0_100 = arith.constant 0 : index
    %c0_101 = arith.constant 0 : index
    %141 = vector.load %arg10[%c0_100, %c0_101] : memref<256x128xbf16, #tpu.memory_space<vmem>>, vector<256x128xbf16>
    %cst_102 = arith.constant dense<0.000000e+00> : vector<8x128xf32>
    %142 = tpu.matmul %140, %141, %cst_102 {dimension_numbers = #tpu.dot_dimension_numbers<[1], [0], [0], [1], [0, 0, 1, 1], [], []>} : vector<8x256xbf16>, vector<256x128xbf16>, vector<8x128xf32> -> vector<8x128xf32>
    %cst_103 = arith.constant dense<0.000000e+00> : vector<128xf32>
    %143 = vector.multi_reduction <add>, %142, %cst_103 [0] : vector<8x128xf32> to vector<128xf32>
    %144 = vector.shape_cast %143 : vector<128xf32> to vector<1x128xf32>
    %cst_104 = arith.constant 2.500000e-01 : f32
    %145 = vector.broadcast %cst_104 : f32 to vector<1x128xf32>
    %146 = arith.mulf %144, %145 : vector<1x128xf32>
    %147 = arith.mulf %142, %142 : vector<8x128xf32>
    %cst_105 = arith.constant dense<0.000000e+00> : vector<128xf32>
    %148 = vector.multi_reduction <add>, %147, %cst_105 [0] : vector<8x128xf32> to vector<128xf32>
    %149 = vector.shape_cast %148 : vector<128xf32> to vector<1x128xf32>
    %cst_106 = arith.constant 2.500000e-01 : f32
    %150 = vector.broadcast %cst_106 : f32 to vector<1x128xf32>
    %151 = arith.mulf %149, %150 : vector<1x128xf32>
    %152 = arith.mulf %146, %146 : vector<1x128xf32>
    %153 = arith.subf %151, %152 : vector<1x128xf32>
    %cst_107 = arith.constant 0.000000e+00 : f32
    %154 = vector.broadcast %cst_107 : f32 to vector<1x128xf32>
    %155 = arith.maximumf %153, %154 : vector<1x128xf32>
    %156 = vector.broadcast %146 : vector<1x128xf32> to vector<8x128xf32>
    %157 = arith.subf %142, %156 : vector<8x128xf32>
    %cst_108 = arith.constant 9.99999974E-6 : f32
    %158 = vector.broadcast %cst_108 : f32 to vector<1x128xf32>
    %159 = arith.addf %155, %158 : vector<1x128xf32>
    %160 = math.rsqrt %159 : vector<1x128xf32>
    %161 = vector.broadcast %160 : vector<1x128xf32> to vector<8x128xf32>
    %162 = arith.mulf %157, %161 : vector<8x128xf32>
    %c0_109 = arith.constant 0 : index
    %c0_110 = arith.constant 0 : index
    %163 = vector.load %arg11[%c0_109, %c0_110] : memref<1x128xf32, #tpu.memory_space<vmem>>, vector<1x128xf32>
    %164 = vector.broadcast %163 : vector<1x128xf32> to vector<8x128xf32>
    %165 = arith.mulf %162, %164 : vector<8x128xf32>
    %c0_111 = arith.constant 0 : index
    %c0_112 = arith.constant 0 : index
    %166 = vector.load %arg12[%c0_111, %c0_112] : memref<1x128xf32, #tpu.memory_space<vmem>>, vector<1x128xf32>
    %167 = vector.broadcast %166 : vector<1x128xf32> to vector<8x128xf32>
    %168 = arith.addf %165, %167 : vector<8x128xf32>
    %cst_113 = arith.constant 0.000000e+00 : f32
    %169 = vector.broadcast %cst_113 : f32 to vector<8x128xf32>
    %170 = arith.cmpf oge, %168, %169 : vector<8x128xf32>
    %cst_114 = arith.constant 2.000000e-01 : f32
    %171 = vector.broadcast %cst_114 : f32 to vector<8x128xf32>
    %172 = arith.mulf %171, %168 : vector<8x128xf32>
    %173 = arith.select %170, %168, %172 : vector<8x128xi1>, vector<8x128xf32>
    %174 = vector.extract_strided_slice %173 {offsets = [0, 0], sizes = [2, 128], strides = [1, 1]} : vector<8x128xf32> to vector<2x128xf32>
    %c0_115 = arith.constant 0 : index
    %c0_116 = arith.constant 0 : index
    %175 = vector.load %arg20[%c0_115, %c0_116] : memref<16x128xf32, #tpu.memory_space<vmem>>, vector<2x128xf32>
    tpu.vector_store %arg20[%c0_115, %c0_116], %174 {strides = array<i32>} : memref<16x128xf32, #tpu.memory_space<vmem>>, vector<2x128xf32>,
    %176 = vector.extract_strided_slice %173 {offsets = [2, 0], sizes = [2, 128], strides = [1, 1]} : vector<8x128xf32> to vector<2x128xf32>
    %c8_117 = arith.constant 8 : index
    %c0_118 = arith.constant 0 : index
    %177 = vector.load %arg20[%c8_117, %c0_118] : memref<16x128xf32, #tpu.memory_space<vmem>>, vector<2x128xf32>
    tpu.vector_store %arg20[%c8_117, %c0_118], %176 {strides = array<i32>} : memref<16x128xf32, #tpu.memory_space<vmem>>, vector<2x128xf32>,
    %c0_119 = arith.constant 0 : index
    %c0_120 = arith.constant 0 : index
    %178 = vector.load %arg20[%c0_119, %c0_120] : memref<16x128xf32, #tpu.memory_space<vmem>>, vector<1x128xf32>
    %c1_121 = arith.constant 1 : index
    %c0_122 = arith.constant 0 : index
    %179 = vector.load %arg20[%c1_121, %c0_122] : memref<16x128xf32, #tpu.memory_space<vmem>>, vector<1x128xf32>
    %180 = tpu.concatenate %178, %179 in 1 : vector<1x128xf32>, vector<1x128xf32> -> vector<1x256xf32>
    %c8_123 = arith.constant 8 : index
    %c0_124 = arith.constant 0 : index
    %181 = vector.load %arg20[%c8_123, %c0_124] : memref<16x128xf32, #tpu.memory_space<vmem>>, vector<1x128xf32>
    %c9_125 = arith.constant 9 : index
    %c0_126 = arith.constant 0 : index
    %182 = vector.load %arg20[%c9_125, %c0_126] : memref<16x128xf32, #tpu.memory_space<vmem>>, vector<1x128xf32>
    %183 = tpu.concatenate %181, %182 in 1 : vector<1x128xf32>, vector<1x128xf32> -> vector<1x256xf32>
    %184 = tpu.concatenate %180, %183 in 0 : vector<1x256xf32>, vector<1x256xf32> -> vector<2x256xf32>
    %cst_127 = arith.constant 0.000000e+00 : f32
    %185 = vector.broadcast %cst_127 : f32 to vector<6x256xf32>
    %186 = tpu.concatenate %184, %185 in 0 : vector<2x256xf32>, vector<6x256xf32> -> vector<8x256xf32>
    %187 = arith.truncf %186 : vector<8x256xf32> to vector<8x256xbf16>
    %c0_128 = arith.constant 0 : index
    %c0_129 = arith.constant 0 : index
    %188 = vector.load %arg13[%c0_128, %c0_129] : memref<256x128xbf16, #tpu.memory_space<vmem>>, vector<256x128xbf16>
    %cst_130 = arith.constant dense<0.000000e+00> : vector<8x128xf32>
    %189 = tpu.matmul %187, %188, %cst_130 {dimension_numbers = #tpu.dot_dimension_numbers<[1], [0], [0], [1], [0, 0, 1, 1], [], []>} : vector<8x256xbf16>, vector<256x128xbf16>, vector<8x128xf32> -> vector<8x128xf32>
    %cst_131 = arith.constant 0.000000e+00 : f32
    %190 = vector.broadcast %cst_131 : f32 to vector<8x128xf32>
    %191 = arith.subf %190, %189 : vector<8x128xf32>
    %192 = math.exp %191 : vector<8x128xf32>
    %cst_132 = arith.constant 1.000000e+00 : f32
    %193 = vector.broadcast %cst_132 : f32 to vector<8x128xf32>
    %194 = arith.addf %193, %192 : vector<8x128xf32>
    %cst_133 = arith.constant 1.000000e+00 : f32
    %195 = vector.broadcast %cst_133 : f32 to vector<8x128xf32>
    %196 = arith.divf %195, %194 : vector<8x128xf32>
    %c0_134 = arith.constant 0 : index
    %c0_135 = arith.constant 0 : index
    %197 = vector.load %arg16[%c0_134, %c0_135] : memref<8x128xf32, #tpu.memory_space<vmem>>, vector<8x128xf32>
    tpu.vector_store %arg16[%c0_134, %c0_135], %196 {strides = array<i32>} : memref<8x128xf32, #tpu.memory_space<vmem>>, vector<8x128xf32>,
    return
  }
}

</mosaic_0001>

<bundles_post_ra>
// kernel: forward.1
= control target key start
LH: loop header
LB: loop body
LE: loop exit
PB: predicated region body
PF: predicated region fallthrough
CT: control target
= control target key end

     0   :  { %s2616_s0 = inlined_call_operand.vmem [shape: f32[48,128], index: 0, kind: input, shape index: {}]   ;;  %s2617_s1 = inlined_call_operand.hbm [shape: bf16[512,128], index: 1, kind: input, shape index: {}]   ;;  %s2618_s2 = inlined_call_operand.vmem [shape: f32[1,128], index: 2, kind: input, shape index: {}]   ;;  %s2619_s3 = inlined_call_operand.vmem [shape: f32[1,128], index: 3, kind: input, shape index: {}, may-alias: {3,6,9,12,15}]   ;;  %s2620_s4 = inlined_call_operand.hbm [shape: bf16[512,128], index: 4, kind: input, shape index: {}]   ;;  %s2621_s5 = inlined_call_operand.vmem [shape: f32[1,128], index: 5, kind: input, shape index: {}]   ;;  %s2622_s6 = inlined_call_operand.vmem [shape: f32[1,128], index: 6, kind: input, shape index: {}, may-alias: {3,6,9,12,15}]   ;;  %s2623_s7 = inlined_call_operand.hbm [shape: bf16[512,128], index: 7, kind: input, shape index: {}]   ;;  %s2624_s8 = inlined_call_operand.vmem [shape: f32[1,128], index: 8, kind: input, shape index: {}]   ;;  %s2625_s9 = inlined_call_operand.vmem [shape: f32[1,128], index: 9, kind: input, shape index: {}, may-alias: {3,6,9,12,15}]   ;;  %s2626_s10 = inlined_call_operand.vmem [shape: bf16[256,128], index: 10, kind: input, shape index: {}]   ;;  %s2627_s11 = inlined_call_operand.vmem [shape: f32[1,128], index: 11, kind: input, shape index: {}]   ;;  %s2628_s12 = inlined_call_operand.vmem [shape: f32[1,128], index: 12, kind: input, shape index: {}, may-alias: {3,6,9,12,15}]   ;;  %s2629_s13 = inlined_call_operand.hbm [shape: bf16[256,128], index: 13, kind: input, shape index: {}]   ;;  %s2630_s14 = inlined_call_operand.vmem [shape: f32[1,128], index: 14, kind: input, shape index: {}]   ;;  %s2631_s15 = inlined_call_operand.vmem [shape: f32[1,128], index: 15, kind: input, shape index: {}, may-alias: {3,6,9,12,15}]   ;;  %s2632_s16 = inlined_call_operand.vmem [shape: f32[8,128], index: 16, kind: output, shape index: {}]  }
   0x1   :  { %2634 = sst [smem:[#allocation16_spill]] %s2616_s0 }
   0x2   :  { %21 = vsyncpa [#allocation7], 0 }
   0x3   :  { %22 = vsyncpa [#allocation9], 0 }
   0x4   :  { %23 = vsyncpa [#allocation12], 0  ;;  %s2327_s19 = smov [#allocation8]   ;;  %s2328_s2 = smov [#allocation6]  }
   0x5   :  { %s47_s20 = sshll.u32 %s2327_s19, 4  ;;  %s31_s21 = sshll.u32 %s2328_s2, 4  ;;  %s48_s20 = int_to_ptr.vmem [resolvable:$true] %s47_s20  ;;  %s2419_s21 = int_to_ptr.vmem [resolvable:$true] %s31_s21 }
   0x6   :  { %s2233_s14 = scalar_lea.hbm %s2620_s4, 4096 }
   0x7   :  { %p2234_p0 = scmp.ne.s32.totalorder %s2620_s4, %s2233_s14  ;;  %p2237_p1 = scmp.lt.u32.totalorder %s2233_s14, %s2620_s4 }
   0x9   :  { %p2239_p2 = pnand %p2237_p1, %p2234_p0 }
   0xb   :  { %2242 = shalt.err (!%p2239_p2)
}
   0xc   :  { %s2243_s26 = scalar_lea.vmem %s48_s20, 4096  ;;  %p2248_p4 = scmp.lt.s32.totalorder %s48_s20, %s48_s20 }
   0xd   :  { %p2244_p3 = scmp.ne.s32.totalorder %s48_s20, %s2243_s26  ;;  %p2249_p5 = scmp.lt.s32.totalorder %s2243_s26, %s2243_s26 }
   0xf   :  { %p2250_p6 = por %p2249_p5, %p2248_p4 }
  0x11   :  { %p2251_p7 = pnand %p2250_p6, %p2244_p3 }
  0x13   :  { %2254 = shalt.err (!%p2251_p7)
}
  0x14   :  { %s2329_s27 = smov 64   ;;  %s2330_s28 = smov 4  }
  0x15   :  { %53 = dma.hbm_to_vmem [thread:$0]  %s2620_s4, 4096, %s48_s20, [#allocation9], %s2329_s27, %s2329_s27, %s2330_s28  }
  0x16   :  { %s2255_s18 = scalar_lea.hbm %s2617_s1, 4096 }
  0x17   :  { %p2256_p8 = scmp.ne.s32.totalorder %s2617_s1, %s2255_s18  ;;  %p2259_p9 = scmp.lt.u32.totalorder %s2255_s18, %s2617_s1 }
  0x19   :  { %p2261_p10 = pnand %p2259_p9, %p2256_p8 }
  0x1b   :  { %2264 = shalt.err (!%p2261_p10)
}
  0x1c   :  { %s2265_s14 = scalar_lea.vmem %s2419_s21, 4096  ;;  %p2270_p12 = scmp.lt.s32.totalorder %s2419_s21, %s2419_s21 }
  0x1d   :  { %p2266_p11 = scmp.ne.s32.totalorder %s2419_s21, %s2265_s14  ;;  %p2271_p13 = scmp.lt.s32.totalorder %s2265_s14, %s2265_s14 }
  0x1f   :  { %p2272_p0 = por %p2271_p13, %p2270_p12 }
  0x21   :  { %p2273_p1 = pnand %p2272_p0, %p2266_p11 }
  0x23   :  { %2276 = shalt.err (!%p2273_p1)
}
  0x24   :  { %37 = dma.hbm_to_vmem [thread:$0]  %s2617_s1, 4096, %s2419_s21, [#allocation7], %s2329_s27, %s2329_s27, %s2330_s28  }
  0x25   :  { %s2331_s23 = smov [#allocation10]   ;;  %s2332_s15 = smov [#allocation11]  }
  0x26   :  { %s63_s24 = sshll.u32 %s2331_s23, 4  ;;  %s85_s25 = sshll.u32 %s2332_s15, 4  ;;  %s64_s24 = int_to_ptr.vmem [resolvable:$true] %s63_s24  ;;  %s2456_s25 = int_to_ptr.vmem [resolvable:$true] %s85_s25 }
  0x27   :  { %s2277_s29 = scalar_lea.hbm %s2623_s7, 4096 }
  0x28   :  { %p2278_p2 = scmp.ne.s32.totalorder %s2623_s7, %s2277_s29  ;;  %p2281_p3 = scmp.lt.u32.totalorder %s2277_s29, %s2623_s7 }
  0x2a   :  { %p2283_p4 = pnand %p2281_p3, %p2278_p2 }
  0x2c   :  { %2286 = shalt.err (!%p2283_p4)
}
  0x2d   :  { %s2287_s1 = scalar_lea.vmem %s64_s24, 4096  ;;  %p2292_p6 = scmp.lt.s32.totalorder %s64_s24, %s64_s24 }
  0x2e   :  { %p2288_p5 = scmp.ne.s32.totalorder %s64_s24, %s2287_s1  ;;  %p2293_p7 = scmp.lt.s32.totalorder %s2287_s1, %s2287_s1 }
  0x30   :  { %p2294_p8 = por %p2293_p7, %p2292_p6 }
  0x32   :  { %p2295_p9 = pnand %p2294_p8, %p2288_p5 }
  0x34   :  { %2298 = shalt.err (!%p2295_p9)
}
  0x35   :  { %69 = dma.hbm_to_vmem [thread:$0]  %s2623_s7, 4096, %s64_s24, [#allocation9], %s2329_s27, %s2329_s27, %s2330_s28  }
  0x36   :  { %s2299_s14 = scalar_lea.hbm %s2629_s13, 2048 }
  0x37   :  { %p2300_p10 = scmp.ne.s32.totalorder %s2629_s13, %s2299_s14  ;;  %p2303_p11 = scmp.lt.u32.totalorder %s2299_s14, %s2629_s13 }
  0x39   :  { %p2305_p12 = pnand %p2303_p11, %p2300_p10 }
  0x3b   :  { %2308 = shalt.err (!%p2305_p12)
}
  0x3c   :  { %s2309_s26 = scalar_lea.vmem %s2456_s25, 2048  ;;  %p2314_p0 = scmp.lt.s32.totalorder %s2456_s25, %s2456_s25 }
  0x3d   :  { %p2310_p13 = scmp.ne.s32.totalorder %s2456_s25, %s2309_s26  ;;  %p2315_p1 = scmp.lt.s32.totalorder %s2309_s26, %s2309_s26 }
  0x3f   :  { %p2316_p2 = por %p2315_p1, %p2314_p0 }
  0x41   :  { %p2317_p3 = pnand %p2316_p2, %p2310_p13 }
  0x43   :  { %2320 = shalt.err (!%p2317_p3)
}
  0x44   :  { %91 = dma.hbm_to_vmem [thread:$0]  %s2629_s13, 2048, %s2456_s25, [#allocation12], %s2329_s27, %s2329_s27, %s2330_s28  }
  0x45   :  { %2321 = dma.done.wait [#allocation7], 4096  }
  0x46   :  { %2322 = vsyncadd [#allocation7], 4294963200 }
  0x47   :  { %2323 = dma.done.wait [#allocation9], 8192  }
  0x48   :  { %2324 = vsyncadd [#allocation9], 4294959104 }
  0x49   :  { %2325 = dma.done.wait [#allocation12], 2048  }
  0x4a   :  { %2326 = vsyncadd [#allocation12], 4294965248  ;;  %v2095_v0 = vld [vmem:[#allocation6 + $0x40] sm:$0xff]   ;;  %v2099_v4 = vld [vmem:[#allocation6 + $0x48] sm:$0xff]   ;;  %s2635_s28 = sld [smem:[#allocation16_spill]]  ;;  %v2333_v56 = vmov 0.0  }
  0x4b   :  { %v2096_v1 = vld [vmem:[#allocation6 + $0xc0] sm:$0xff]   ;;  %1912 = vmatprep.subr.bf16.mxu0 %v2095_v0  ;;  %v2100_v5 = vld [vmem:[#allocation6 + $0xc8] sm:$0xff]   ;;  %v2103_v8 = vld [vmem:[#allocation6 + $0x50] sm:$0xff]   ;;  %109 = vst [vmem:[#allocation2] sm:$0xff] %v2333_v56  ;;  %vm511_vm2 = vcmask 1043456   ;;  %vm926_vm4 = vcmask 1041408  }
  0x4c   :  { %v2097_v2 = vld [vmem:[#allocation6] sm:$0xff]   ;;  %1934 = vmatprep.subr.bf16.mxu1 %v2096_v1  ;;  %v2101_v6 = vld [vmem:[#allocation6 + $0x8] sm:$0xff]   ;;  %v2104_v9 = vld [vmem:[#allocation6 + $0xd0] sm:$0xff]   ;;  %110 = vst [vmem:[#allocation2 + $0x8] sm:$0xff] %v2333_v56  ;;  %vm1558_vm8 = vcmask 1040384  }
  0x4d   :  { %v2098_v3 = vld [vmem:[#allocation6 + $0x80] sm:$0xff]   ;;  %1913 = vmatpush3.bf16.msra.mxu0 %v2097_v2  ;;  %v2102_v7 = vld [vmem:[#allocation6 + $0x88] sm:$0xff]   ;;  %v2105_v10 = vld [vmem:[#allocation6 + $0x10] sm:$0xff]   ;;  %111 = vst [vmem:[#allocation2 + $0x10] sm:$0xff] %v2333_v56 }
  0x4e   :  { %1935 = vmatpush3.bf16.msra.mxu1 %v2098_v3  ;;  %1914 = vmatprep.subr.bf16.mxu0 %v2099_v4  ;;  %v2106_v11 = vld [vmem:[#allocation6 + $0x90] sm:$0xff]   ;;  %v2107_v12 = vld [vmem:[#allocation6 + $0x58] sm:$0xff]   ;;  %v2111_v16 = vld [vmem:[#allocation6 + $0x60] sm:$0xff]   ;;  %112 = vst [vmem:[#allocation2 + $0x18] sm:$0xff] %v2333_v56 }
  0x4f   :  { %1936 = vmatprep.subr.bf16.mxu1 %v2100_v5  ;;  %v2108_v13 = vld [vmem:[#allocation6 + $0xd8] sm:$0xff]   ;;  %v2112_v17 = vld [vmem:[#allocation6 + $0xe0] sm:$0xff]   ;;  %v2115_v20 = vld [vmem:[#allocation6 + $0x68] sm:$0xff]   ;;  %113 = vst [vmem:[#allocation3] sm:$0xff] %v2333_v56 }
  0x50   :  { %v2109_v14 = vld [vmem:[#allocation6 + $0x18] sm:$0xff]   ;;  %v2113_v18 = vld [vmem:[#allocation6 + $0x20] sm:$0xff]   ;;  %v2116_v21 = vld [vmem:[#allocation6 + $0xe8] sm:$0xff]   ;;  %114 = vst [vmem:[#allocation3 + $0x8] sm:$0xff] %v2333_v56 }
  0x51   :  { %1915 = vmatpush3.bf16.msra.mxu0 %v2101_v6  ;;  %v2110_v15 = vld [vmem:[#allocation6 + $0x98] sm:$0xff]   ;;  %v2114_v19 = vld [vmem:[#allocation6 + $0xa0] sm:$0xff]   ;;  %v2117_v22 = vld [vmem:[#allocation6 + $0x28] sm:$0xff]   ;;  %115 = vst [vmem:[#allocation4] sm:$0xff] %v2333_v56 }
  0x52   :  { %1937 = vmatpush3.bf16.msra.mxu1 %v2102_v7  ;;  %1916 = vmatprep.subr.bf16.mxu0 %v2103_v8  ;;  %v2118_v23 = vld [vmem:[#allocation6 + $0xa8] sm:$0xff]   ;;  %v2119_v24 = vld [vmem:[#allocation6 + $0x70] sm:$0xff]   ;;  %v2123_v28 = vld [vmem:[#allocation6 + $0x78] sm:$0xff]   ;;  %116 = vst [vmem:[#allocation4 + $0x8] sm:$0xff] %v2333_v56 }
  0x53   :  { %1938 = vmatprep.subr.bf16.mxu1 %v2104_v9  ;;  %v2120_v25 = vld [vmem:[#allocation6 + $0xf0] sm:$0xff]   ;;  %v2124_v29 = vld [vmem:[#allocation6 + $0xf8] sm:$0xff]   ;;  %v2127_v44 = vld [vmem:[#allocation8 + $0x40] sm:$0xff]   ;;  %117 = vst [vmem:[#allocation5] sm:$0xff] %v2333_v56 }
  0x54   :  { %v2121_v26 = vld [vmem:[#allocation6 + $0x30] sm:$0xff]   ;;  %v2125_v30 = vld [vmem:[#allocation6 + $0x38] sm:$0xff]   ;;  %v2128_v45 = vld [vmem:[#allocation8 + $0xc0] sm:$0xff]   ;;  %118 = vst [vmem:[#allocation5 + $0x8] sm:$0xff] %v2333_v56 }
  0x55   :  { %1917 = vmatpush3.bf16.msra.mxu0 %v2105_v10  ;;  %v2122_v27 = vld [vmem:[#allocation6 + $0xb0] sm:$0xff]   ;;  %v2126_v31 = vld [vmem:[#allocation6 + $0xb8] sm:$0xff]   ;;  %v2129_v46 = vld [vmem:[#allocation8] sm:$0xff]  }
  0x56   :  { %1939 = vmatpush3.bf16.msra.mxu1 %v2106_v11  ;;  %1918 = vmatprep.subr.bf16.mxu0 %v2107_v12  ;;  %v1747_v32 = vld [vmem:[%s2635_s28 + $0x1] ss:$2 sm:$0xff]  ;;  %v119_v37 = vld [vmem:[%s2635_s28] ss:$2 sm:$0xff]  ;;  %v2130_v47 = vld [vmem:[#allocation8 + $0x80] sm:$0xff]  }
  0x57   :  { %1940 = vmatprep.subr.bf16.mxu1 %v2108_v13  ;;  %v1751_v33 = vld [vmem:[%s2635_s28 + $0x19] ss:$2 sm:$0xff]  ;;  %v1750_v38 = vld [vmem:[%s2635_s28 + $0x18] ss:$2 sm:$0xff]  ;;  %v2139_v57 = vld [vmem:[#allocation8 + $0x58] sm:$0xff]  }
  0x58   :  { %v1749_v34 = vld [vmem:[%s2635_s28 + $0x3] ss:$2 sm:$0xff]  ;;  %v135_v35 = vpack.c.bf16 %v1751_v33, %v1747_v32  ;;  %v134_v40 = vpack.c.bf16 %v1750_v38, %v119_v37  ;;  %v1748_v41 = vld [vmem:[%s2635_s28 + $0x2] ss:$2 sm:$0xff]  ;;  %v2131_v48 = vld [vmem:[#allocation8 + $0x48] sm:$0xff]  }
  0x59   :  { %1919 = vmatpush3.bf16.msra.mxu0 %v2109_v14  ;;  %v1753_v36 = vld [vmem:[%s2635_s28 + $0x1b] ss:$2 sm:$0xff]  ;;  %v1752_v42 = vld [vmem:[%s2635_s28 + $0x1a] ss:$2 sm:$0xff]  ;;  %v2143_v61 = vld [vmem:[#allocation8 + $0x60] sm:$0xff]  }
  0x5a   :  { %1941 = vmatpush3.bf16.msra.mxu1 %v2110_v15  ;;  %1920 = vmatprep.subr.bf16.mxu0 %v2111_v16  ;;  %v137_v39 = vpack.c.bf16 %v1753_v36, %v1749_v34  ;;  %v136_v43 = vpack.c.bf16 %v1752_v42, %v1748_v41  ;;  %v2132_v49 = vld [vmem:[#allocation8 + $0xc8] sm:$0xff]   ;;  %v2135_v52 = vld [vmem:[#allocation8 + $0x50] sm:$0xff]   ;;  %v2140_v58 = vld [vmem:[#allocation8 + $0xd8] sm:$0xff]  }
  0x5b   :  { %1942 = vmatprep.subr.bf16.mxu1 %v2112_v17  ;;  %426 = vmatprep.mubr.bf16.mxu0 %v135_v35  ;;  %v2133_v50 = vld [vmem:[#allocation8 + $0x8] sm:$0xff]   ;;  %v2136_v53 = vld [vmem:[#allocation8 + $0xd0] sm:$0xff]   ;;  %v2141_v59 = vld [vmem:[#allocation8 + $0x18] sm:$0xff]  }
  0x5c   :  { %467 = vmatprep.mubr.bf16.mxu1 %v137_v39  ;;  %v2134_v51 = vld [vmem:[#allocation8 + $0x88] sm:$0xff]   ;;  %v2137_v54 = vld [vmem:[#allocation8 + $0x10] sm:$0xff]   ;;  %v2142_v60 = vld [vmem:[#allocation8 + $0x98] sm:$0xff]  }
  0x5d   :  { %1921 = vmatpush3.bf16.msra.mxu0 %v2113_v18  ;;  %v2138_v55 = vld [vmem:[#allocation8 + $0x90] sm:$0xff]   ;;  %v2144_v62 = vld [vmem:[#allocation8 + $0xe0] sm:$0xff]   ;;  %v2147_v1 = vld [vmem:[#allocation8 + $0x68] sm:$0xff]  }
  0x5e   :  { %1943 = vmatpush3.bf16.msra.mxu1 %v2114_v19  ;;  %1922 = vmatprep.subr.bf16.mxu0 %v2115_v20  ;;  %v2145_v63 = vld [vmem:[#allocation8 + $0x20] sm:$0xff]   ;;  %v2148_v2 = vld [vmem:[#allocation8 + $0xe8] sm:$0xff]   ;;  %v2151_v5 = vld [vmem:[#allocation8 + $0x70] sm:$0xff]  }
  0x5f   :  { %1944 = vmatprep.subr.bf16.mxu1 %v2116_v21  ;;  %v2146_v0 = vld [vmem:[#allocation8 + $0xa0] sm:$0xff]   ;;  %v2149_v3 = vld [vmem:[#allocation8 + $0x28] sm:$0xff]   ;;  %v2152_v6 = vld [vmem:[#allocation8 + $0xf0] sm:$0xff]  }
  0x60   :  { %v2150_v4 = vld [vmem:[#allocation8 + $0xa8] sm:$0xff]   ;;  %v2153_v7 = vld [vmem:[#allocation8 + $0x30] sm:$0xff]   ;;  %v2155_v9 = vld [vmem:[#allocation8 + $0x78] sm:$0xff]  }
  0x61   :  { %1923 = vmatpush3.bf16.msra.mxu0 %v2117_v22  ;;  %v2154_v8 = vld [vmem:[#allocation8 + $0xb0] sm:$0xff]   ;;  %v2156_v10 = vld [vmem:[#allocation8 + $0xf8] sm:$0xff]   ;;  %v2164_v56 = vld [vmem:[#allocation10 + $0xc8] sm:$0xff]  }
  0x62   :  { %1945 = vmatpush3.bf16.msra.mxu1 %v2118_v23  ;;  %1924 = vmatprep.subr.bf16.mxu0 %v2119_v24  ;;  %v2157_v11 = vld [vmem:[#allocation8 + $0x38] sm:$0xff]   ;;  %vm2530_vm5 = vmpackc.low %vm511_vm2, %vm511_vm2 }
  0x63   :  { %1946 = vmatprep.subr.bf16.mxu1 %v2120_v25  ;;  %v2158_v12 = vld [vmem:[#allocation8 + $0xb8] sm:$0xff]   ;;  %vm1906_vm9 = vmpackc.low %vm926_vm4, %vm926_vm4 }
  0x65   :  { %1925 = vmatpush3.bf16.msra.mxu0 %v2121_v26 }
  0x66   :  { %1947 = vmatpush3.bf16.msra.mxu1 %v2122_v27  ;;  %1926 = vmatprep.subr.bf16.mxu0 %v2123_v28 }
  0x67   :  { %1948 = vmatprep.subr.bf16.mxu1 %v2124_v29 }
  0x69   :  { %1927 = vmatpush3.bf16.msra.mxu0 %v2125_v30 }
  0x6a   :  { %1949 = vmatpush3.bf16.msra.mxu1 %v2126_v31  ;;  %1956 = vmatprep.subr.bf16.mxu0 %v2127_v44 }
  0x6b   :  { %1978 = vmatprep.subr.bf16.mxu1 %v2128_v45 }
  0x6c   :  { %427 = vmatmul.mubr.bf16.vlgmr.msra.gmra.mrb[0].mxu0 %v134_v40 }
  0x6d   :  { %468 = vmatmul.mubr.bf16.vlgmr.msra.gmra.mrb[0].mxu1 %v136_v43  ;;  %1957 = vmatpush3.bf16.msra.mxu0 %v2129_v46 }
  0x6e   :  { %1979 = vmatpush3.bf16.msra.mxu1 %v2130_v47  ;;  %1958 = vmatprep.subr.bf16.mxu0 %v2131_v48 }
  0x6f   :  { %1980 = vmatprep.subr.bf16.mxu1 %v2132_v49 }
  0x71   :  { %1959 = vmatpush3.bf16.msra.mxu0 %v2133_v50 }
  0x72   :  { %1981 = vmatpush3.bf16.msra.mxu1 %v2134_v51  ;;  %1960 = vmatprep.subr.bf16.mxu0 %v2135_v52  ;;  %v2159_v51 = vld [vmem:[#allocation10 + $0x40] sm:$0xff]  }
  0x73   :  { %1982 = vmatprep.subr.bf16.mxu1 %v2136_v53  ;;  %v2160_v52 = vld [vmem:[#allocation10 + $0xc0] sm:$0xff]  }
  0x74   :  { %v2161_v53 = vld [vmem:[#allocation10] sm:$0xff]  }
  0x75   :  { %1961 = vmatpush3.bf16.msra.mxu0 %v2137_v54  ;;  %v2162_v54 = vld [vmem:[#allocation10 + $0x80] sm:$0xff]  }
  0x76   :  { %1983 = vmatpush3.bf16.msra.mxu1 %v2138_v55  ;;  %1962 = vmatprep.subr.bf16.mxu0 %v2139_v57  ;;  %v2163_v55 = vld [vmem:[#allocation10 + $0x48] sm:$0xff]  }
  0x77   :  { %1984 = vmatprep.subr.bf16.mxu1 %v2140_v58  ;;  %v2165_v57 = vld [vmem:[#allocation10 + $0x8] sm:$0xff]  }
  0x78   :  { %v2166_v58 = vld [vmem:[#allocation10 + $0x88] sm:$0xff]  }
  0x79   :  { %1963 = vmatpush3.bf16.msra.mxu0 %v2141_v59  ;;  %v2167_v59 = vld [vmem:[#allocation10 + $0x50] sm:$0xff]  }
  0x7a   :  { %1985 = vmatpush3.bf16.msra.mxu1 %v2142_v60  ;;  %1964 = vmatprep.subr.bf16.mxu0 %v2143_v61  ;;  %v2168_v60 = vld [vmem:[#allocation10 + $0xd0] sm:$0xff]  }
  0x7b   :  { %1986 = vmatprep.subr.bf16.mxu1 %v2144_v62  ;;  %v2169_v61 = vld [vmem:[#allocation10 + $0x10] sm:$0xff]  }
  0x7c   :  { %v2170_v62 = vld [vmem:[#allocation10 + $0x90] sm:$0xff]  }
  0x7d   :  { %1965 = vmatpush3.bf16.msra.mxu0 %v2145_v63  ;;  %v2171_v63 = vld [vmem:[#allocation10 + $0x58] sm:$0xff]  }
  0x7e   :  { %1987 = vmatpush3.bf16.msra.mxu1 %v2146_v0  ;;  %1966 = vmatprep.subr.bf16.mxu0 %v2147_v1  ;;  %v2172_v0 = vld [vmem:[#allocation10 + $0xd8] sm:$0xff]  }
  0x7f   :  { %1988 = vmatprep.subr.bf16.mxu1 %v2148_v2  ;;  %v2173_v1 = vld [vmem:[#allocation10 + $0x18] sm:$0xff]  }
  0x80   :  { %v2174_v2 = vld [vmem:[#allocation10 + $0x98] sm:$0xff]  }
  0x81   :  { %1967 = vmatpush3.bf16.msra.mxu0 %v2149_v3  ;;  %v2175_v3 = vld [vmem:[#allocation10 + $0x60] sm:$0xff]  }
  0x82   :  { %1989 = vmatpush3.bf16.msra.mxu1 %v2150_v4  ;;  %1968 = vmatprep.subr.bf16.mxu0 %v2151_v5  ;;  %v2176_v4 = vld [vmem:[#allocation10 + $0xe0] sm:$0xff]  }
  0x83   :  { %1990 = vmatprep.subr.bf16.mxu1 %v2152_v6  ;;  %v2177_v5 = vld [vmem:[#allocation10 + $0x20] sm:$0xff]  }
  0x84   :  { %v2178_v6 = vld [vmem:[#allocation10 + $0xa0] sm:$0xff]  }
  0x85   :  { %1969 = vmatpush3.bf16.msra.mxu0 %v2153_v7  ;;  %v2179_v7 = vld [vmem:[#allocation10 + $0x68] sm:$0xff]  }
  0x86   :  { %1991 = vmatpush3.bf16.msra.mxu1 %v2154_v8  ;;  %1970 = vmatprep.subr.bf16.mxu0 %v2155_v9  ;;  %v2180_v8 = vld [vmem:[#allocation10 + $0xe8] sm:$0xff]  }
  0x87   :  { %1992 = vmatprep.subr.bf16.mxu1 %v2156_v10  ;;  %v2181_v9 = vld [vmem:[#allocation10 + $0x28] sm:$0xff]  }
  0x88   :  { %v2182_v10 = vld [vmem:[#allocation10 + $0xa8] sm:$0xff]  }
  0x89   :  { %1971 = vmatpush3.bf16.msra.mxu0 %v2157_v11  ;;  %v2183_v11 = vld [vmem:[#allocation10 + $0x70] sm:$0xff]  }
  0x8a   :  { %1993 = vmatpush3.bf16.msra.mxu1 %v2158_v12  ;;  %2000 = vmatprep.subr.bf16.mxu0 %v2159_v51  ;;  %v2184_v12 = vld [vmem:[#allocation10 + $0xf0] sm:$0xff]  }
  0x8b   :  { %2022 = vmatprep.subr.bf16.mxu1 %v2160_v52  ;;  %v1818_v51 = vld [vmem:[%s2621_s5] ss:$0 sm:$0xff] }
 0x13f   :  { %v1928_v13 = vpop.f32.mrb[0].mxu0 }
 0x140   :  { %v1950_v14 = vpop.f32.mrb[0].mxu1  ;;  %v1929_v15 = vpop.f32.mrb[1].mxu0 }
 0x141   :  { %v1930_v16 = vadd.f32 %v1929_v15, %v1928_v13  ;;  %v1951_v17 = vpop.f32.mrb[1].mxu1  ;;  %v1931_v18 = vpop.f32.mrb[2].mxu0  ;;  %v2185_v13 = vld [vmem:[#allocation10 + $0x30] sm:$0xff]   ;;  %v2187_v15 = vld [vmem:[#allocation10 + $0x78] sm:$0xff]  }
 0x142   :  { %v1952_v19 = vadd.f32 %v1951_v17, %v1950_v14  ;;  %v1953_v20 = vpop.f32.mrb[2].mxu1  ;;  %v1932_v21 = vpop.f32.mrb[3].mxu0  ;;  %v2186_v14 = vld [vmem:[#allocation10 + $0xb0] sm:$0xff]   ;;  %v2189_v17 = vld [vmem:[#allocation10 + $0x38] sm:$0xff]  }
 0x143   :  { %v1933_v22 = vadd.f32 %v1932_v21, %v1931_v18  ;;  %v1954_v23 = vpop.f32.mrb[3].mxu1  ;;  %v2190_v18 = vld [vmem:[#allocation10 + $0xb8] sm:$0xff]  }
 0x144   :  { %v470_v24 = vadd.f32 %v1952_v19, %v1930_v16  ;;  %v1955_v25 = vadd.f32 %v1954_v23, %v1953_v20  ;;  %v2188_v16 = vld [vmem:[#allocation10 + $0xf8] sm:$0xff]  }
 0x146   :  { %vm476_vm0 = vcmp.ge.f32.partialorder %v470_v24, 0.0  ;;  %v478_v26 = vmul.f32 0.2, %v470_v24  ;;  %v473_v27 = vadd.f32 %v1955_v25, %v1933_v22 }
 0x148   :  { %v480_v28 = vsel %vm476_vm0, %v470_v24, %v478_v26  ;;  %vm477_vm1 = vcmp.ge.f32.partialorder %v473_v27, 0.0  ;;  %v479_v29 = vmul.f32 0.2, %v473_v27 }
 0x149   :  { %482 = vst [vmem:[#allocation2 + $0x1] sm:$0xff] %v480_v28 }
 0x14a   :  { %v481_v30 = vsel %vm477_vm1, %v473_v27, %v479_v29 }
 0x14b   :  { %483 = vst [vmem:[#allocation2 + $0x11] sm:$0xff] %v481_v30 }
 0x150   :  { %v486_v31 = vld [vmem:[#allocation2 + $0x1] ss:$2 sm:$0xf]  ;;  %v484_v42 = vld [vmem:[#allocation2] ss:$2 sm:$0xf] }
 0x151   :  { %v490_v33 = vld [vmem:[#allocation2 + $0x3] ss:$2 sm:$0xf]  ;;  %v488_v47 = vld [vmem:[#allocation2 + $0x2] ss:$2 sm:$0xf] }
 0x152   :  { %v494_v32 = vld [vmem:[#allocation2 + $0x11] ss:$2 sm:$0xf]  ;;  %v492_v37 = vld [vmem:[#allocation2 + $0x10] ss:$2 sm:$0xf] }
 0x153   :  { %v498_v34 = vld [vmem:[#allocation2 + $0x13] ss:$2 sm:$0xf]  ;;  %v504_v35 = vrot.slane %v494_v32, 4  ;;  %v503_v38 = vrot.slane %v492_v37, 4 }
 0x154   :  { %v506_v36 = vrot.slane %v498_v34, 4  ;;  %v496_v39 = vld [vmem:[#allocation2 + $0x12] ss:$2 sm:$0xf] }
 0x155   :  { %v513_v40 = vsel %vm511_vm2, %v486_v31, %v504_v35  ;;  %v505_v43 = vrot.slane %v496_v39, 4  ;;  %v512_v46 = vsel %vm511_vm2, %v484_v42, %v503_v38 }
 0x156   :  { %v515_v41 = vsel %vm511_vm2, %v490_v33, %v506_v36  ;;  %v517_v44 = vpack.c.bf16 %v513_v40, %v513_v40  ;;  %v516_v48 = vpack.c.bf16 %v512_v46, %v512_v46 }
 0x157   :  { %v519_v45 = vpack.c.bf16 %v515_v41, %v515_v41  ;;  %v514_v49 = vsel %vm511_vm2, %v488_v47, %v505_v43 }
 0x158   :  { %808 = vmatprep.mubr.bf16.mxu0 %v517_v44  ;;  %v518_v50 = vpack.c.bf16 %v514_v49, %v514_v49 }
 0x159   :  { %848 = vmatprep.mubr.bf16.mxu1 %v519_v45  ;;  %809 = vmatmul.mubr.bf16.vlgmr.msra.gmra.mrb[4].mxu0 %v516_v48 }
 0x15a   :  { %849 = vmatmul.mubr.bf16.vlgmr.msra.gmra.mrb[4].mxu1 %v518_v50  ;;  %2001 = vmatpush3.bf16.msra.mxu0 %v2161_v53  ;;  %v1819_v53 = vld [vmem:[%s2622_s6] ss:$0 sm:$0xff] }
 0x15b   :  { %2023 = vmatpush3.bf16.msra.mxu1 %v2162_v54  ;;  %2002 = vmatprep.subr.bf16.mxu0 %v2163_v55 }
 0x15c   :  { %2024 = vmatprep.subr.bf16.mxu1 %v2164_v56 }
 0x15e   :  { %2003 = vmatpush3.bf16.msra.mxu0 %v2165_v57 }
 0x15f   :  { %2025 = vmatpush3.bf16.msra.mxu1 %v2166_v58  ;;  %2004 = vmatprep.subr.bf16.mxu0 %v2167_v59 }
 0x160   :  { %2026 = vmatprep.subr.bf16.mxu1 %v2168_v60 }
 0x162   :  { %2005 = vmatpush3.bf16.msra.mxu0 %v2169_v61 }
 0x163   :  { %2027 = vmatpush3.bf16.msra.mxu1 %v2170_v62  ;;  %2006 = vmatprep.subr.bf16.mxu0 %v2171_v63  ;;  %v2217_v63 = vld [vmem:[#allocation11 + $0x68] sm:$0xff]  }
 0x164   :  { %2028 = vmatprep.subr.bf16.mxu1 %v2172_v0 }
 0x166   :  { %2007 = vmatpush3.bf16.msra.mxu0 %v2173_v1 }
 0x167   :  { %2029 = vmatpush3.bf16.msra.mxu1 %v2174_v2  ;;  %2008 = vmatprep.subr.bf16.mxu0 %v2175_v3 }
 0x168   :  { %2030 = vmatprep.subr.bf16.mxu1 %v2176_v4 }
 0x16a   :  { %2009 = vmatpush3.bf16.msra.mxu0 %v2177_v5 }
 0x16b   :  { %2031 = vmatpush3.bf16.msra.mxu1 %v2178_v6  ;;  %2010 = vmatprep.subr.bf16.mxu0 %v2179_v7 }
 0x16c   :  { %2032 = vmatprep.subr.bf16.mxu1 %v2180_v8 }
 0x16e   :  { %2011 = vmatpush3.bf16.msra.mxu0 %v2181_v9 }
 0x16f   :  { %2033 = vmatpush3.bf16.msra.mxu1 %v2182_v10  ;;  %2012 = vmatprep.subr.bf16.mxu0 %v2183_v11 }
 0x170   :  { %2034 = vmatprep.subr.bf16.mxu1 %v2184_v12 }
 0x172   :  { %2013 = vmatpush3.bf16.msra.mxu0 %v2185_v13 }
 0x173   :  { %2035 = vmatpush3.bf16.msra.mxu1 %v2186_v14  ;;  %2014 = vmatprep.subr.bf16.mxu0 %v2187_v15  ;;  %v2191_v15 = vld [vmem:[%s2626_s10 + $0x40] sm:$0xff]  }
 0x174   :  { %2036 = vmatprep.subr.bf16.mxu1 %v2188_v16  ;;  %v2192_v16 = vld [vmem:[%s2626_s10] sm:$0xff]  }
 0x176   :  { %2015 = vmatpush3.bf16.msra.mxu0 %v2189_v17  ;;  %v2193_v17 = vld [vmem:[%s2626_s10 + $0x48] sm:$0xff]  }
 0x177   :  { %2037 = vmatpush3.bf16.msra.mxu1 %v2190_v18  ;;  %2044 = vmatprep.subr.bf16.mxu0 %v2191_v15  ;;  %v2194_v18 = vld [vmem:[%s2626_s10 + $0x8] sm:$0xff]  }
 0x22c   :  { %v1972_v19 = vpop.f32.mrb[4].mxu0 }
 0x22d   :  { %v1994_v20 = vpop.f32.mrb[4].mxu1  ;;  %v1973_v21 = vpop.f32.mrb[5].mxu0 }
 0x22e   :  { %v1974_v22 = vadd.f32 %v1973_v21, %v1972_v19  ;;  %v1995_v23 = vpop.f32.mrb[5].mxu1  ;;  %v1975_v24 = vpop.f32.mrb[6].mxu0  ;;  %v2195_v19 = vld [vmem:[%s2626_s10 + $0x50] sm:$0xff]   ;;  %v2197_v21 = vld [vmem:[%s2626_s10 + $0x58] sm:$0xff]  }
 0x22f   :  { %v1996_v25 = vadd.f32 %v1995_v23, %v1994_v20  ;;  %v1997_v26 = vpop.f32.mrb[6].mxu1  ;;  %v1976_v27 = vpop.f32.mrb[7].mxu0  ;;  %v2196_v20 = vld [vmem:[%s2626_s10 + $0x10] sm:$0xff]   ;;  %v2199_v23 = vld [vmem:[%s2626_s10 + $0x60] sm:$0xff]  }
 0x230   :  { %v1998_v28 = vpop.f32.mrb[7].mxu1  ;;  %v2200_v24 = vld [vmem:[%s2626_s10 + $0x20] sm:$0xff]   ;;  %v2202_v26 = vld [vmem:[%s2626_s10 + $0x28] sm:$0xff]   ;;  %v2203_v27 = vld [vmem:[%s2626_s10 + $0x70] sm:$0xff]  }
 0x231   :  { %v851_v29 = vadd.f32 %v1996_v25, %v1974_v22  ;;  %v2198_v22 = vld [vmem:[%s2626_s10 + $0x18] sm:$0xff]   ;;  %v2201_v25 = vld [vmem:[%s2626_s10 + $0x68] sm:$0xff]   ;;  %v2204_v28 = vld [vmem:[%s2626_s10 + $0x30] sm:$0xff]  }
 0x233   :  { %v856_v30 = vrot.slane %v851_v29, 4  ;;  %v863_v31 = vmul.f32 %v851_v29, %v851_v29 }
 0x235   :  { %v857_v32 = vadd.f32 %v856_v30, %v851_v29  ;;  %v864_v33 = vrot.slane %v863_v31, 4  ;;  %v2206_v30 = vld [vmem:[%s2626_s10 + $0x38] sm:$0xff]  }
 0x237   :  { %v858_v34 = vrot.slane %v857_v32, 2  ;;  %v865_v35 = vadd.f32 %v864_v33, %v863_v31 }
 0x239   :  { %v859_v36 = vadd.f32 %v858_v34, %v857_v32  ;;  %v866_v37 = vrot.slane %v865_v35, 2 }
 0x23b   :  { %v860_v38 = vrot.slane %v859_v36, 1  ;;  %v867_v39 = vadd.f32 %v866_v37, %v865_v35 }
 0x23d   :  { %v861_v40 = vadd.f32 %v860_v38, %v859_v36  ;;  %v868_v41 = vrot.slane %v867_v39, 1 }
 0x23f   :  { %v862_v42 = vmul.f32 0.125, %v861_v40  ;;  %v869_v43 = vadd.f32 %v868_v41, %v867_v39 }
 0x241   :  { %v870_v44 = vmul.f32 0.125, %v869_v43  ;;  %v871_v45 = vmul.f32 %v862_v42, %v862_v42  ;;  %v874_v49 = vsub.f32 %v851_v29, %v862_v42  ;;  %v2205_v29 = vld [vmem:[%s2626_s10 + $0x78] sm:$0xff]  }
 0x243   :  { %v872_v46 = vsub.f32 %v870_v44, %v871_v45 }
 0x245   :  { %v873_v47 = vmax.f32 %v872_v46, 0.0 }
 0x247   :  { %v875_v48 = vadd.f32 1e-05, %v873_v47 }
 0x249   :  { %2223 = vrsqrt.f32 %v875_v48 }
 0x253   :  { %v2224_v50 = vpop.eup %2223 }
 0x254   :  { %v877_v52 = vmul.f32 %v2224_v50, %v874_v49 }
 0x256   :  { %v885_v54 = vmul.f32 %v1818_v51, %v877_v52 }
 0x258   :  { %v893_v55 = vadd.f32 %v1819_v53, %v885_v54 }
 0x25a   :  { %vm894_vm3 = vcmp.ge.f32.partialorder %v893_v55, 0.0  ;;  %v895_v56 = vmul.f32 0.2, %v893_v55 }
 0x25c   :  { %v896_v57 = vsel %vm894_vm3, %v893_v55, %v895_v56 }
 0x25d   :  { %897 = vst [vmem:[#allocation3 + $0x1] ss:$8 sps:$4 sm:$0xff] %v896_v57  }
 0x264   :  { %v909_v58 = vld [vmem:[#allocation3 + $0x9] ss:$2 sm:$0x3]  ;;  %v901_v60 = vld [vmem:[#allocation3 + $0x1] ss:$2 sm:$0x3] }
 0x265   :  { %v919_v59 = vrot.slane %v909_v58, 6  ;;  %v913_v61 = vld [vmem:[#allocation3 + $0xb] ss:$2 sm:$0x3] }
 0x266   :  { %v921_v0 = vrot.slane %v913_v61, 6  ;;  %v907_v1 = vld [vmem:[#allocation3 + $0x8] ss:$2 sm:$0x3] }
 0x267   :  { %v928_v62 = vsel %vm926_vm4, %v901_v60, %v919_v59  ;;  %v905_v3 = vld [vmem:[#allocation3 + $0x3] ss:$2 sm:$0x3]  ;;  %v918_v4 = vrot.slane %v907_v1, 6 }
 0x268   :  { %v1853_v2 = vpack.c.bf16 %v928_v62, %v928_v62  ;;  %v930_v5 = vsel %vm926_vm4, %v905_v3, %v921_v0  ;;  %v899_v6 = vld [vmem:[#allocation3] ss:$2 sm:$0x3]  ;;  %v911_v7 = vld [vmem:[#allocation3 + $0xa] ss:$2 sm:$0x3] }
 0x269   :  { %v1859_v8 = vpack.c.bf16 %v930_v5, %v930_v5  ;;  %v927_v9 = vsel %vm926_vm4, %v899_v6, %v918_v4  ;;  %v920_v10 = vrot.slane %v911_v7, 6  ;;  %v903_v12 = vld [vmem:[#allocation3 + $0x2] ss:$2 sm:$0x3]  ;;  %v1864_v0 = vld [vmem:[%s2624_s8] ss:$0 sm:$0xff] }
 0x26a   :  { %1854 = vmatprep.mubr.msk.bf16.mxu0 %vm2530_vm5, %v1853_v2  ;;  %v1856_v11 = vpack.c.bf16 %v927_v9, %v927_v9  ;;  %v1865_v2 = vld [vmem:[%s2625_s9] ss:$0 sm:$0xff] }
 0x26b   :  { %1860 = vmatprep.mubr.msk.bf16.mxu1 %vm2530_vm5, %v1859_v8  ;;  %v929_v13 = vsel %vm926_vm4, %v903_v12, %v920_v10 }
 0x26c   :  { %1857 = vmatmul.mubr.msk.bf16.vlgmr.msra.gmra.mrb[8].mxu0 %vm2530_vm5, %v1856_v11  ;;  %v1862_v14 = vpack.c.bf16 %v929_v13, %v929_v13 }
 0x26d   :  { %2045 = vmatpush3.bf16.msra.mxu0 %v2192_v16 }
 0x26e   :  { %1863 = vmatmul.mubr.msk.bf16.vlgmr.msra.gmra.mrb[8].mxu1 %vm2530_vm5, %v1862_v14  ;;  %2046 = vmatprep.subr.bf16.mxu0 %v2193_v17  ;;  %v2207_v17 = vld [vmem:[#allocation11 + $0x40] sm:$0xff]  }
 0x26f   :  { %2066 = vmatprep.subr.bf16.mxu1 %v2207_v17 }
 0x271   :  { %2047 = vmatpush3.bf16.msra.mxu0 %v2194_v18  ;;  %v2208_v18 = vld [vmem:[#allocation11] sm:$0xff]  }
 0x272   :  { %2048 = vmatprep.subr.bf16.mxu0 %v2195_v19  ;;  %2067 = vmatpush3.bf16.msra.mxu1 %v2208_v18  ;;  %v2209_v19 = vld [vmem:[#allocation11 + $0x48] sm:$0xff]  }
 0x273   :  { %2068 = vmatprep.subr.bf16.mxu1 %v2209_v19 }
 0x275   :  { %2049 = vmatpush3.bf16.msra.mxu0 %v2196_v20  ;;  %v2210_v20 = vld [vmem:[#allocation11 + $0x8] sm:$0xff]  }
 0x276   :  { %2050 = vmatprep.subr.bf16.mxu0 %v2197_v21  ;;  %2069 = vmatpush3.bf16.msra.mxu1 %v2210_v20  ;;  %v2211_v21 = vld [vmem:[#allocation11 + $0x50] sm:$0xff]  }
 0x277   :  { %2070 = vmatprep.subr.bf16.mxu1 %v2211_v21 }
 0x279   :  { %2051 = vmatpush3.bf16.msra.mxu0 %v2198_v22  ;;  %v2212_v22 = vld [vmem:[#allocation11 + $0x10] sm:$0xff]  }
 0x27a   :  { %2052 = vmatprep.subr.bf16.mxu0 %v2199_v23  ;;  %2071 = vmatpush3.bf16.msra.mxu1 %v2212_v22  ;;  %v2213_v23 = vld [vmem:[#allocation11 + $0x58] sm:$0xff]  }
 0x27b   :  { %2072 = vmatprep.subr.bf16.mxu1 %v2213_v23 }
 0x27d   :  { %2053 = vmatpush3.bf16.msra.mxu0 %v2200_v24  ;;  %v2214_v24 = vld [vmem:[#allocation11 + $0x18] sm:$0xff]  }
 0x27e   :  { %2054 = vmatprep.subr.bf16.mxu0 %v2201_v25  ;;  %2073 = vmatpush3.bf16.msra.mxu1 %v2214_v24  ;;  %v2215_v25 = vld [vmem:[#allocation11 + $0x60] sm:$0xff]  }
 0x27f   :  { %2074 = vmatprep.subr.bf16.mxu1 %v2215_v25 }
 0x281   :  { %2055 = vmatpush3.bf16.msra.mxu0 %v2202_v26  ;;  %v2216_v26 = vld [vmem:[#allocation11 + $0x20] sm:$0xff]  }
 0x282   :  { %2056 = vmatprep.subr.bf16.mxu0 %v2203_v27  ;;  %2075 = vmatpush3.bf16.msra.mxu1 %v2216_v26  ;;  %v2218_v27 = vld [vmem:[#allocation11 + $0x28] sm:$0xff]  }
 0x283   :  { %2076 = vmatprep.subr.bf16.mxu1 %v2217_v63 }
 0x285   :  { %2057 = vmatpush3.bf16.msra.mxu0 %v2204_v28  ;;  %v2219_v28 = vld [vmem:[#allocation11 + $0x70] sm:$0xff]  }
 0x286   :  { %2058 = vmatprep.subr.bf16.mxu0 %v2205_v29  ;;  %2077 = vmatpush3.bf16.msra.mxu1 %v2218_v27  ;;  %v2220_v29 = vld [vmem:[#allocation11 + $0x30] sm:$0xff]  }
 0x287   :  { %2078 = vmatprep.subr.bf16.mxu1 %v2219_v28 }
 0x289   :  { %2059 = vmatpush3.bf16.msra.mxu0 %v2206_v30  ;;  %v2221_v30 = vld [vmem:[#allocation11 + $0x78] sm:$0xff]  }
 0x28a   :  { %2079 = vmatpush3.bf16.msra.mxu1 %v2220_v29 }
 0x28b   :  { %2080 = vmatprep.subr.bf16.mxu1 %v2221_v30 }
 0x33f   :  { %v2016_v31 = vpop.f32.mrb[8].mxu0 }
 0x340   :  { %v2017_v32 = vpop.f32.mrb[9].mxu0 }
 0x341   :  { %v2038_v33 = vpop.f32.mrb[8].mxu1  ;;  %v2018_v34 = vadd.f32 %v2017_v32, %v2016_v31  ;;  %v2019_v35 = vpop.f32.mrb[10].mxu0  ;;  %v2222_v31 = vld [vmem:[#allocation11 + $0x38] sm:$0xff]  }
 0x342   :  { %v2039_v36 = vpop.f32.mrb[9].mxu1  ;;  %v2020_v37 = vpop.f32.mrb[11].mxu0  ;;  %2081 = vmatpush3.bf16.msra.mxu1 %v2222_v31 }
 0x343   :  { %v2040_v38 = vadd.f32 %v2039_v36, %v2038_v33  ;;  %v2041_v39 = vpop.f32.mrb[10].mxu1 }
 0x344   :  { %v2042_v40 = vpop.f32.mrb[11].mxu1 }
 0x345   :  { %v1270_v41 = vadd.f32 %v2040_v38, %v2018_v34 }
 0x347   :  { %v1275_v42 = vrot.slane %v1270_v41, 4  ;;  %v1282_v43 = vmul.f32 %v1270_v41, %v1270_v41 }
 0x349   :  { %v1276_v44 = vadd.f32 %v1275_v42, %v1270_v41  ;;  %v1283_v45 = vrot.slane %v1282_v43, 4 }
 0x34b   :  { %v1277_v46 = vrot.slane %v1276_v44, 2  ;;  %v1284_v47 = vadd.f32 %v1283_v45, %v1282_v43 }
 0x34d   :  { %v1278_v48 = vadd.f32 %v1277_v46, %v1276_v44  ;;  %v1285_v49 = vrot.slane %v1284_v47, 2 }
 0x34f   :  { %v1279_v50 = vrot.slane %v1278_v48, 1  ;;  %v1286_v51 = vadd.f32 %v1285_v49, %v1284_v47 }
 0x351   :  { %v1280_v52 = vadd.f32 %v1279_v50, %v1278_v48  ;;  %v1287_v53 = vrot.slane %v1286_v51, 1 }
 0x353   :  { %v1281_v54 = vmul.f32 0.25, %v1280_v52  ;;  %v1288_v55 = vadd.f32 %v1287_v53, %v1286_v51 }
 0x355   :  { %v1289_v56 = vmul.f32 0.25, %v1288_v55  ;;  %v1290_v57 = vmul.f32 %v1281_v54, %v1281_v54  ;;  %v1293_v61 = vsub.f32 %v1270_v41, %v1281_v54 }
 0x357   :  { %v1291_v58 = vsub.f32 %v1289_v56, %v1290_v57 }
 0x359   :  { %v1292_v59 = vmax.f32 %v1291_v58, 0.0  ;;  %v1888_v58 = vld [vmem:[%s2627_s11] ss:$0 sm:$0xff] }
 0x35b   :  { %v1294_v60 = vadd.f32 1e-05, %v1292_v59 }
 0x35d   :  { %2225 = vrsqrt.f32 %v1294_v60  ;;  %v1889_v60 = vld [vmem:[%s2628_s12] ss:$0 sm:$0xff] }
 0x367   :  { %v2226_v62 = vpop.eup %2225 }
 0x368   :  { %v1296_v1 = vmul.f32 %v2226_v62, %v1293_v61 }
 0x36a   :  { %v1304_v3 = vmul.f32 %v1864_v0, %v1296_v1 }
 0x36c   :  { %v1312_v4 = vadd.f32 %v1865_v2, %v1304_v3 }
 0x36e   :  { %vm1313_vm6 = vcmp.ge.f32.partialorder %v1312_v4, 0.0  ;;  %v1314_v5 = vmul.f32 0.2, %v1312_v4 }
 0x370   :  { %v1315_v6 = vsel %vm1313_vm6, %v1312_v4, %v1314_v5 }
 0x371   :  { %1316 = vst [vmem:[#allocation4 + $0x1] sm:$0x3] %v1315_v6  ;;  %1317 = vst [vmem:[#allocation4 + $0x7] sm:$0xc] %v1315_v6 }
 0x378   :  { %v1324_v7 = vld [vmem:[#allocation4 + $0x9] ss:$2 sm:$0x3]  ;;  %v1320_v9 = vld [vmem:[#allocation4 + $0x1] ss:$2 sm:$0x3] }
 0x379   :  { %v1328_v8 = vrot.slane %v1324_v7, 6  ;;  %v1322_v10 = vld [vmem:[#allocation4 + $0x8] ss:$2 sm:$0x3] }
 0x37a   :  { %v1327_v12 = vrot.slane %v1322_v10, 6  ;;  %v1318_v14 = vld [vmem:[#allocation4] ss:$2 sm:$0x3] }
 0x37b   :  { %v1332_v11 = vsel %vm926_vm4, %v1320_v9, %v1328_v8 }
 0x37c   :  { %v1883_v13 = vpack.c.bf16 %v1332_v11, %v1332_v11  ;;  %v1331_v15 = vsel %vm926_vm4, %v1318_v14, %v1327_v12 }
 0x37d   :  { %v1886_v16 = vpack.c.bf16 %v1331_v15, %v1331_v15 }
 0x37e   :  { %1884 = vmatprep.mubr.msk.bf16.mxu0 %vm2530_vm5, %v1883_v13 }
 0x37f   :  { %1887 = vmatmul.mubr.msk.bf16.vlgmr.msra.gmra.mrb[12].mxu0 %vm2530_vm5, %v1886_v16 }
 0x452   :  { %v2060_v32 = vpop.f32.mrb[12].mxu0 }
 0x453   :  { %v2061_v33 = vpop.f32.mrb[13].mxu0 }
 0x454   :  { %v2062_v34 = vadd.f32 %v2061_v33, %v2060_v32  ;;  %v2063_v35 = vpop.f32.mrb[14].mxu0 }
 0x455   :  { %v2064_v36 = vpop.f32.mrb[15].mxu0 }
 0x456   :  { %v1505_v37 = vrot.slane %v2062_v34, 4  ;;  %v1512_v38 = vmul.f32 %v2062_v34, %v2062_v34 }
 0x458   :  { %v1506_v39 = vadd.f32 %v2062_v34, %v1505_v37  ;;  %v1513_v40 = vrot.slane %v1512_v38, 4 }
 0x45a   :  { %v1507_v41 = vrot.slane %v1506_v39, 2  ;;  %v1514_v42 = vadd.f32 %v1513_v40, %v1512_v38 }
 0x45c   :  { %v1508_v43 = vadd.f32 %v1507_v41, %v1506_v39  ;;  %v1515_v44 = vrot.slane %v1514_v42, 2 }
 0x45e   :  { %v1509_v45 = vrot.slane %v1508_v43, 1  ;;  %v1516_v46 = vadd.f32 %v1515_v44, %v1514_v42 }
 0x460   :  { %v1510_v47 = vadd.f32 %v1509_v45, %v1508_v43  ;;  %v1517_v48 = vrot.slane %v1516_v46, 1 }
 0x462   :  { %v1511_v49 = vmul.f32 0.25, %v1510_v47  ;;  %v1518_v50 = vadd.f32 %v1517_v48, %v1516_v46 }
 0x464   :  { %v1519_v51 = vmul.f32 0.25, %v1518_v50  ;;  %v1520_v52 = vmul.f32 %v1511_v49, %v1511_v49  ;;  %v1523_v56 = vsub.f32 %v2062_v34, %v1511_v49 }
 0x466   :  { %v1521_v53 = vsub.f32 %v1519_v51, %v1520_v52 }
 0x468   :  { %v1522_v54 = vmax.f32 %v1521_v53, 0.0 }
 0x46a   :  { %v1524_v55 = vadd.f32 1e-05, %v1522_v54 }
 0x46c   :  { %2227 = vrsqrt.f32 %v1524_v55 }
 0x476   :  { %v2228_v57 = vpop.eup %2227 }
 0x477   :  { %v1526_v59 = vmul.f32 %v2228_v57, %v1523_v56 }
 0x479   :  { %v1534_v61 = vmul.f32 %v1888_v58, %v1526_v59 }
 0x47b   :  { %v1542_v62 = vadd.f32 %v1889_v60, %v1534_v61 }
 0x47d   :  { %vm1543_vm7 = vcmp.ge.f32.partialorder %v1542_v62, 0.0  ;;  %v1544_v0 = vmul.f32 0.2, %v1542_v62 }
 0x47f   :  { %v1545_v1 = vsel %vm1543_vm7, %v1542_v62, %v1544_v0 }
 0x480   :  { %1546 = vst [vmem:[#allocation5] sm:$0x3] %v1545_v1  ;;  %1547 = vst [vmem:[#allocation5 + $0x6] sm:$0xc] %v1545_v1 }
 0x487   :  { %v1551_v2 = vld [vmem:[#allocation5 + $0x9] sm:$0x1]  ;;  %v1550_v4 = vld [vmem:[#allocation5 + $0x8] sm:$0x1]  ;;  %v1549_v5 = vld [vmem:[#allocation5 + $0x1] sm:$0x1] }
 0x488   :  { %v1555_v3 = vrot.slane %v1551_v2, 7  ;;  %v1554_v6 = vrot.slane %v1550_v4, 7  ;;  %v1548_v8 = vld [vmem:[#allocation5] sm:$0x1] }
 0x48a   :  { %v1560_v7 = vsel %vm1558_vm8, %v1549_v5, %v1555_v3  ;;  %v1559_v10 = vsel %vm1558_vm8, %v1548_v8, %v1554_v6 }
 0x48b   :  { %v1907_v9 = vpack.c.bf16 %v1560_v7, %v1560_v7  ;;  %v1910_v11 = vpack.c.bf16 %v1559_v10, %v1559_v10 }
 0x48d   :  { %1908 = vmatprep.mubr.msk.bf16.mxu1 %vm1906_vm9, %v1907_v9 }
 0x48e   :  { %1911 = vmatmul.mubr.msk.bf16.vlgmr.msra.gmra.mrb[12].mxu1 %vm1906_vm9, %v1910_v11 }
 0x561   :  { %v2082_v12 = vpop.f32.mrb[12].mxu1 }
 0x562   :  { %v2083_v13 = vpop.f32.mrb[13].mxu1 }
 0x563   :  { %v2084_v14 = vadd.f32 %v2083_v13, %v2082_v12  ;;  %v2085_v15 = vpop.f32.mrb[14].mxu1 }
 0x564   :  { %v2086_v16 = vpop.f32.mrb[15].mxu1 }
 0x565   :  { %v1733_v17 = vsub.f32 0.0, %v2084_v14 }
 0x567   :  { %v1734_v18 = vmul.f32 1.442695, %v1733_v17 }
 0x569   :  { %2229 = vpow2.f32 %v1734_v18 }
 0x573   :  { %v2230_v19 = vpop.eup %2229 }
 0x574   :  { %v1736_v20 = vadd.f32 1.0, %v2230_v19 }
 0x576   :  { %2231 = vrcp.f32 %v1736_v20 }
 0x580   :  { %v2232_v21 = vpop.eup %2231 }
 0x581   :  { %1739 = vst [vmem:[%s2632_s16] sm:$0xff] %v2232_v21 }
 0x582   :  { %1744 = vsyncpa [#allocation7], 1 }
 0x583   :  { %1745 = vsyncpa [#allocation9], 1 }
 0x584   :  { %1746 = vsyncpa [#allocation12], 1 }

</bundles_post_ra>
